<compile_context>
chip_gen: v7x
topology: tpu7x:2x2x1
jax: 0.10.0
libtpu: 0.0.40
codegen_flags: <defaults>
</compile_context>

<pallas_src>
import jax
import jax.numpy as jnp
from jax.experimental import pallas as pl
from jax.experimental.pallas import tpu as pltpu

_LANE = 128
_BATCH_ALIGN = 16   # bf16 sublane packing (also satisfies the f32 8-row tile)


def _round_up(x, m):
    return ((x + m - 1) // m) * m


def _build_kernel(num_layers, layer_out_dims):
    """layer_out_dims[i] = padded output width of layer i (static ints)."""

    def kernel(x_ref, *rest):
        o_ref = rest[-1]
        bias_ref = rest[-2]          # (num_layers, max_out_pad) f32, resident
        w_refs = rest[:-2]           # per-layer bf16 weights (in_pad, out_pad), resident

        # Layer 0: plain Linear.  x streams in as bf16; MXU accumulates in f32.
        d = layer_out_dims[0]
        h = (jnp.dot(x_ref[...], w_refs[0][...],
                     preferred_element_type=jnp.float32)
             + bias_ref[0:1, :d])

        # Layers 1 .. L-2: ResidualBlock -> relu(Linear(h)) + h.  Residual stream f32.
        for i in range(1, num_layers - 1):
            d = layer_out_dims[i]
            out = (jnp.dot(h.astype(jnp.bfloat16), w_refs[i][...],
                           preferred_element_type=jnp.float32)
                   + bias_ref[i:i + 1, :d])
            h = jnp.maximum(out, 0.0) + h

        # Last layer: plain Linear.
        i = num_layers - 1
        d = layer_out_dims[i]
        h = (jnp.dot(h.astype(jnp.bfloat16), w_refs[i][...],
                     preferred_element_type=jnp.float32)
             + bias_ref[i:i + 1, :d])

        o_ref[...] = h.astype(o_ref.dtype)

    return kernel


def _vmem_budget_bytes():
    """~75% of this generation's physical VMEM (96 MiB on v5e/v6e, 48 MiB on v7x)."""
    try:
        cap = int(pltpu.get_tpu_info().vmem_capacity_bytes)
    except Exception:
        cap = 64 << 20   # conservative fallback: v7x per-TC VMEM
    return max(int(cap * 0.75), 16 << 20)


def _choose_tile(batch, requested, in_pad0, out_pad_last, max_pad,
                 resident_bytes, vmem_budget):
    """Pick the batch tile from the VMEM budget; keep >=2 grid steps when possible."""
    # Per-batch-row VMEM cost: double-buffered bf16 input tile + f32 output tile
    # plus ~4 live f32 activation tiles of the widest padded feature dim.
    per_row = 2 * in_pad0 * 2 + 2 * out_pad_last * 4 + 4 * max_pad * 4
    avail = max(vmem_budget - resident_bytes, 4 << 20)
    tb_cap = max(int(avail // per_row), _BATCH_ALIGN)

    tb = max(_BATCH_ALIGN, min(int(requested), tb_cap))
    if tb >= 256:            # dense on the 256x256 MXU (v6e/v7x)
        tb = (tb // 256) * 256
    elif tb >= 128:          # dense on the 128-wide MXU (v5e)
        tb = 128
    else:
        tb = (tb // _BATCH_ALIGN) * _BATCH_ALIGN

    if tb >= batch:
        # Guarantee >= 2 grid steps so ("parallel",) shards across both TCs on
        # v7x; harmless on single-TC v5e/v6e.
        if batch > _BATCH_ALIGN:
            tb = _round_up((batch + 1) // 2, _BATCH_ALIGN)
        else:
            tb = _BATCH_ALIGN
    return tb


def transform_model_forward(x, params, *, tile_batch=512):
    """x: (batch, input_dim) f32.
    params: list of (W[in, out] f32, b[out] f32) in logical (unpadded) dims, with
    W already transposed to (in_features, out_features) so each layer computes
    x @ W + b (matches nn.Linear's x @ W.T + b semantics)."""
    num_layers = len(params)
    batch, input_dim = x.shape
    assert num_layers >= 2
    assert input_dim == params[0][0].shape[0]

    in_dims = [p[0].shape[0] for p in params]
    out_dims = [p[0].shape[1] for p in params]
    out_dim = out_dims[-1]

    in_pad = [_round_up(d, _LANE) for d in in_dims]
    out_pad = [_round_up(d, _LANE) for d in out_dims]
    max_out_pad = max(out_pad)

    # ---- pack operands: bf16 zero-padded weights + one f32 bias matrix --------
    ws, bias_rows = [], []
    for li, (w, b) in enumerate(params):
        wp = jnp.zeros((in_pad[li], out_pad[li]), jnp.float32)
        wp = wp.at[: w.shape[0], : w.shape[1]].set(w)
        ws.append(wp.astype(jnp.bfloat16))
        bias_rows.append(
            jnp.zeros((max_out_pad,), jnp.float32).at[: b.shape[0]].set(b.reshape(-1)))
    bias = jnp.stack(bias_rows, axis=0)  # (num_layers, max_out_pad) f32

    # ---- generation-aware tile / VMEM budget -----------------------------------
    # Budget resident set assuming worst-case double buffering (safe either way).
    resident_bytes = 2 * (sum(int(w.size) * 2 for w in ws) + int(bias.size) * 4)
    vmem_budget = _vmem_budget_bytes()
    tb = _choose_tile(batch, tile_batch, in_pad[0], out_pad[-1],
                      max(in_pad + out_pad), resident_bytes, vmem_budget)
    batch_pad = _round_up(batch, tb)
    grid = (batch_pad // tb,)

    # ---- pad activations; stream them in bf16 ----------------------------------
    xp = jnp.zeros((batch_pad, in_pad[0]), jnp.float32)
    xp = xp.at[:batch, :input_dim].set(x).astype(jnp.bfloat16)

    kernel = _build_kernel(num_layers, tuple(out_pad))

    def call(single_buffer_resident):
        res_kw = {"pipeline_mode": pl.Buffered(1)} if single_buffer_resident else {}
        in_specs = [pl.BlockSpec((tb, in_pad[0]), lambda i: (i, 0))]        # streamed
        for w in ws:
            in_specs.append(pl.BlockSpec(w.shape, lambda i: (0, 0), **res_kw))  # resident
        in_specs.append(pl.BlockSpec(bias.shape, lambda i: (0, 0), **res_kw))   # resident
        out_spec = pl.BlockSpec((tb, out_pad[-1]), lambda i: (i, 0))
        return pl.pallas_call(
            kernel,
            grid=grid,
            in_specs=in_specs,
            out_specs=out_spec,
            out_shape=jax.ShapeDtypeStruct((batch_pad, out_pad[-1]), jnp.float32),
            compiler_params=pltpu.CompilerParams(
                dimension_semantics=("parallel",),
                vmem_limit_bytes=vmem_budget,
            ),
        )(xp, *ws, bias)

    try:
        out_padded = call(True)
    except Exception:
        # pipeline_mode / pl.Buffered not supported by this JAX version:
        # fall back to default double-buffered resident specs (correct, more VMEM).
        out_padded = call(False)

    return out_padded[:batch, :out_dim]


def init_params(key, input_dim, num_layers, hidden_dim, output_dim):
    """Mirror nn.Linear's U(-1/sqrt(fan_in), 1/sqrt(fan_in)) init.
    Weights are returned already transposed to (in_features, out_features)."""
    dims = [input_dim] + [hidden_dim] * (num_layers - 1) + [output_dim]
    params = []
    for i in range(num_layers):
        fan_in, fan_out = dims[i], dims[i + 1]
        key, kw, kb = jax.random.split(key, 3)
        bound = float(1.0 / (fan_in ** 0.5))
        w = jax.random.uniform(kw, (fan_in, fan_out), jnp.float32, -bound, bound)
        b = jax.random.uniform(kb, (fan_out,), jnp.float32, -bound, bound)
        params.append((w, b))
    return params


def reference_forward_f32(x, params):
    """Pure-f32 JAX reference of the PyTorch forward."""
    h = x @ params[0][0] + params[0][1]
    for i in range(1, len(params) - 1):
        w, b = params[i]
        h = jnp.maximum(h @ w + b, 0.0) + h
    w, b = params[-1]
    return h @ w + b


def reference_forward_bf16(x, params):
    """Reference matching the kernel's numerics (bf16 matmul, f32 accumulate/elementwise)."""
    def mm(h, w):
        return jnp.dot(h.astype(jnp.bfloat16), w.astype(jnp.bfloat16),
                       preferred_element_type=jnp.float32)
    h = mm(x, params[0][0]) + params[0][1]
    for i in range(1, len(params) - 1):
        w, b = params[i]
        h = jnp.maximum(mm(h, w) + b, 0.0) + h
    w, b = params[-1]
    return mm(h, w) + b


if __name__ == "__main__":
    # Small shapes consistent with the module (scaled down from 768/500/300, L=4).
    # Deliberately unaligned dims + non-tile-multiple batch to exercise padding
    # and the >=2-step grid path.
    batch, input_dim, hidden_dim, output_dim, num_layers = 44, 96, 80, 40, 4

    key = jax.random.PRNGKey(0)
    key, kx = jax.random.split(key)
    x = jax.random.normal(kx, (batch, input_dim), jnp.float32)

    params = init_params(key, input_dim, num_layers, hidden_dim, output_dim)

    out = transform_model_forward(x, params)
    out = jax.block_until_ready(out)

    ref_bf16 = reference_forward_bf16(x, params)
    ref_f32 = reference_forward_f32(x, params)

    assert out.shape == (batch, output_dim)
    assert jnp.allclose(out, ref_bf16, atol=1e-2, rtol=1e-2), "mismatch vs bf16 reference"
    assert jnp.allclose(out, ref_f32, atol=5e-2, rtol=5e-2), "mismatch vs f32 reference"

    print("KERNEL_OK")
</pallas_src>

<mosaic_0001>
module attributes {stable_mosaic.version = 11 : i64} {
  func.func @kernel(%arg0: i32, %arg1: memref<32x128xbf16, #tpu.memory_space<vmem>>, %arg2: memref<128x128xbf16, #tpu.memory_space<vmem>>, %arg3: memref<128x128xbf16, #tpu.memory_space<vmem>>, %arg4: memref<128x128xbf16, #tpu.memory_space<vmem>>, %arg5: memref<128x128xbf16, #tpu.memory_space<vmem>>, %arg6: memref<4x128xf32, #tpu.memory_space<vmem>>, %arg7: memref<32x128xf32, #tpu.memory_space<vmem>>) attributes {dimension_semantics = [#tpu.dimension_semantics<parallel>], iteration_bounds = array<i64: 2>, scalar_prefetch = 0 : i64, scratch_operands = 0 : i64, tpu.core_type = #tpu.core_type<tc>, window_params = [{transform_indices = @transform_0, window_bounds = array<i64: 32, 128>}, {pipeline_mode = #tpu.pipeline_mode<synchronous>, transform_indices = @transform_1, window_bounds = array<i64: 128, 128>}, {pipeline_mode = #tpu.pipeline_mode<synchronous>, transform_indices = @transform_2, window_bounds = array<i64: 128, 128>}, {pipeline_mode = #tpu.pipeline_mode<synchronous>, transform_indices = @transform_3, window_bounds = array<i64: 128, 128>}, {pipeline_mode = #tpu.pipeline_mode<synchronous>, transform_indices = @transform_4, window_bounds = array<i64: 128, 128>}, {pipeline_mode = #tpu.pipeline_mode<synchronous>, transform_indices = @transform_5, window_bounds = array<i64: 4, 128>}, {transform_indices = @transform_6, window_bounds = array<i64: 32, 128>}]} {
    %c0 = arith.constant 0 : index
    %c0_0 = arith.constant 0 : index
    %0 = vector.load %arg1[%c0, %c0_0] : memref<32x128xbf16, #tpu.memory_space<vmem>>, vector<32x128xbf16>
    %c0_1 = arith.constant 0 : index
    %c0_2 = arith.constant 0 : index
    %1 = vector.load %arg2[%c0_1, %c0_2] : memref<128x128xbf16, #tpu.memory_space<vmem>>, vector<128x128xbf16>
    %cst = arith.constant dense<0.000000e+00> : vector<32x128xf32>
    %2 = tpu.matmul %0, %1, %cst {dimension_numbers = #tpu.dot_dimension_numbers<[1], [0], [0], [1], [0, 0, 1, 1], [], []>} : vector<32x128xbf16>, vector<128x128xbf16>, vector<32x128xf32> -> vector<32x128xf32>
    %c0_3 = arith.constant 0 : index
    %c0_4 = arith.constant 0 : index
    %3 = vector.load %arg6[%c0_3, %c0_4] : memref<4x128xf32, #tpu.memory_space<vmem>>, vector<1x128xf32>
    %4 = vector.broadcast %3 : vector<1x128xf32> to vector<32x128xf32>
    %5 = arith.addf %2, %4 : vector<32x128xf32>
    %6 = arith.truncf %5 : vector<32x128xf32> to vector<32x128xbf16>
    %c0_5 = arith.constant 0 : index
    %c0_6 = arith.constant 0 : index
    %7 = vector.load %arg3[%c0_5, %c0_6] : memref<128x128xbf16, #tpu.memory_space<vmem>>, vector<128x128xbf16>
    %cst_7 = arith.constant dense<0.000000e+00> : vector<32x128xf32>
    %8 = tpu.matmul %6, %7, %cst_7 {dimension_numbers = #tpu.dot_dimension_numbers<[1], [0], [0], [1], [0, 0, 1, 1], [], []>} : vector<32x128xbf16>, vector<128x128xbf16>, vector<32x128xf32> -> vector<32x128xf32>
    %c1 = arith.constant 1 : index
    %c0_8 = arith.constant 0 : index
    %9 = vector.load %arg6[%c1, %c0_8] : memref<4x128xf32, #tpu.memory_space<vmem>>, vector<1x128xf32>
    %10 = vector.broadcast %9 : vector<1x128xf32> to vector<32x128xf32>
    %11 = arith.addf %8, %10 : vector<32x128xf32>
    %cst_9 = arith.constant 0.000000e+00 : f32
    %12 = vector.broadcast %cst_9 : f32 to vector<32x128xf32>
    %13 = arith.maximumf %11, %12 : vector<32x128xf32>
    %14 = arith.addf %13, %5 : vector<32x128xf32>
    %15 = arith.truncf %14 : vector<32x128xf32> to vector<32x128xbf16>
    %c0_10 = arith.constant 0 : index
    %c0_11 = arith.constant 0 : index
    %16 = vector.load %arg4[%c0_10, %c0_11] : memref<128x128xbf16, #tpu.memory_space<vmem>>, vector<128x128xbf16>
    %cst_12 = arith.constant dense<0.000000e+00> : vector<32x128xf32>
    %17 = tpu.matmul %15, %16, %cst_12 {dimension_numbers = #tpu.dot_dimension_numbers<[1], [0], [0], [1], [0, 0, 1, 1], [], []>} : vector<32x128xbf16>, vector<128x128xbf16>, vector<32x128xf32> -> vector<32x128xf32>
    %c2 = arith.constant 2 : index
    %c0_13 = arith.constant 0 : index
    %18 = vector.load %arg6[%c2, %c0_13] : memref<4x128xf32, #tpu.memory_space<vmem>>, vector<1x128xf32>
    %19 = vector.broadcast %18 : vector<1x128xf32> to vector<32x128xf32>
    %20 = arith.addf %17, %19 : vector<32x128xf32>
    %cst_14 = arith.constant 0.000000e+00 : f32
    %21 = vector.broadcast %cst_14 : f32 to vector<32x128xf32>
    %22 = arith.maximumf %20, %21 : vector<32x128xf32>
    %23 = arith.addf %22, %14 : vector<32x128xf32>
    %24 = arith.truncf %23 : vector<32x128xf32> to vector<32x128xbf16>
    %c0_15 = arith.constant 0 : index
    %c0_16 = arith.constant 0 : index
    %25 = vector.load %arg5[%c0_15, %c0_16] : memref<128x128xbf16, #tpu.memory_space<vmem>>, vector<128x128xbf16>
    %cst_17 = arith.constant dense<0.000000e+00> : vector<32x128xf32>
    %26 = tpu.matmul %24, %25, %cst_17 {dimension_numbers = #tpu.dot_dimension_numbers<[1], [0], [0], [1], [0, 0, 1, 1], [], []>} : vector<32x128xbf16>, vector<128x128xbf16>, vector<32x128xf32> -> vector<32x128xf32>
    %c3 = arith.constant 3 : index
    %c0_18 = arith.constant 0 : index
    %27 = vector.load %arg6[%c3, %c0_18] : memref<4x128xf32, #tpu.memory_space<vmem>>, vector<1x128xf32>
    %28 = vector.broadcast %27 : vector<1x128xf32> to vector<32x128xf32>
    %29 = arith.addf %26, %28 : vector<32x128xf32>
    %c0_19 = arith.constant 0 : index
    %c0_20 = arith.constant 0 : index
    %30 = vector.load %arg7[%c0_19, %c0_20] : memref<32x128xf32, #tpu.memory_space<vmem>>, vector<32x128xf32>
    tpu.vector_store %arg7[%c0_19, %c0_20], %29 {strides = array<i32>} : memref<32x128xf32, #tpu.memory_space<vmem>>, vector<32x128xf32>,
    return
  }
  func.func @transform_0(%arg0: i32) -> (i32, i32) {
    %c0_i32 = arith.constant 0 : i32
    %c0_i32_0 = arith.constant 0 : i32
    return %arg0, %c0_i32 : i32, i32
  }
  func.func @transform_1(%arg0: i32) -> (i32, i32) {
    %c0_i32 = arith.constant 0 : i32
    %c0_i32_0 = arith.constant 0 : i32
    %c0_i32_1 = arith.constant 0 : i32
    return %c0_i32, %c0_i32_0 : i32, i32
  }
  func.func @transform_2(%arg0: i32) -> (i32, i32) {
    %c0_i32 = arith.constant 0 : i32
    %c0_i32_0 = arith.constant 0 : i32
    %c0_i32_1 = arith.constant 0 : i32
    return %c0_i32, %c0_i32_0 : i32, i32
  }
  func.func @transform_3(%arg0: i32) -> (i32, i32) {
    %c0_i32 = arith.constant 0 : i32
    %c0_i32_0 = arith.constant 0 : i32
    %c0_i32_1 = arith.constant 0 : i32
    return %c0_i32, %c0_i32_0 : i32, i32
  }
  func.func @transform_4(%arg0: i32) -> (i32, i32) {
    %c0_i32 = arith.constant 0 : i32
    %c0_i32_0 = arith.constant 0 : i32
    %c0_i32_1 = arith.constant 0 : i32
    return %c0_i32, %c0_i32_0 : i32, i32
  }
  func.func @transform_5(%arg0: i32) -> (i32, i32) {
    %c0_i32 = arith.constant 0 : i32
    %c0_i32_0 = arith.constant 0 : i32
    %c0_i32_1 = arith.constant 0 : i32
    return %c0_i32, %c0_i32_0 : i32, i32
  }
  func.func @transform_6(%arg0: i32) -> (i32, i32) {
    %c0_i32 = arith.constant 0 : i32
    %c0_i32_0 = arith.constant 0 : i32
    return %arg0, %c0_i32 : i32, i32
  }
}

module attributes {stable_mosaic.version = 11 : i64} {
  func.func @kernel(%arg0: i32, %arg1: memref<32x128xbf16, #tpu.memory_space<vmem>>, %arg2: memref<128x128xbf16, #tpu.memory_space<vmem>>, %arg3: memref<128x128xbf16, #tpu.memory_space<vmem>>, %arg4: memref<128x128xbf16, #tpu.memory_space<vmem>>, %arg5: memref<128x128xbf16, #tpu.memory_space<vmem>>, %arg6: memref<4x128xf32, #tpu.memory_space<vmem>>, %arg7: memref<32x128xf32, #tpu.memory_space<vmem>>) attributes {dimension_semantics = [#tpu.dimension_semantics<parallel>], iteration_bounds = array<i64: 2>, scalar_prefetch = 0 : i64, scratch_operands = 0 : i64, tpu.core_type = #tpu.core_type<tc>, window_params = [{transform_indices = @transform_0, window_bounds = array<i64: 32, 128>}, {pipeline_mode = #tpu.pipeline_mode<synchronous>, transform_indices = @transform_1, window_bounds = array<i64: 128, 128>}, {pipeline_mode = #tpu.pipeline_mode<synchronous>, transform_indices = @transform_2, window_bounds = array<i64: 128, 128>}, {pipeline_mode = #tpu.pipeline_mode<synchronous>, transform_indices = @transform_3, window_bounds = array<i64: 128, 128>}, {pipeline_mode = #tpu.pipeline_mode<synchronous>, transform_indices = @transform_4, window_bounds = array<i64: 128, 128>}, {pipeline_mode = #tpu.pipeline_mode<synchronous>, transform_indices = @transform_5, window_bounds = array<i64: 4, 128>}, {transform_indices = @transform_6, window_bounds = array<i64: 32, 128>}]} {
    %c0 = arith.constant 0 : index
    %c0_0 = arith.constant 0 : index
    %0 = vector.load %arg1[%c0, %c0_0] : memref<32x128xbf16, #tpu.memory_space<vmem>>, vector<32x128xbf16>
    %c0_1 = arith.constant 0 : index
    %c0_2 = arith.constant 0 : index
    %1 = vector.load %arg2[%c0_1, %c0_2] : memref<128x128xbf16, #tpu.memory_space<vmem>>, vector<128x128xbf16>
    %cst = arith.constant dense<0.000000e+00> : vector<32x128xf32>
    %2 = tpu.matmul %0, %1, %cst {dimension_numbers = #tpu.dot_dimension_numbers<[1], [0], [0], [1], [0, 0, 1, 1], [], []>} : vector<32x128xbf16>, vector<128x128xbf16>, vector<32x128xf32> -> vector<32x128xf32>
    %c0_3 = arith.constant 0 : index
    %c0_4 = arith.constant 0 : index
    %3 = vector.load %arg6[%c0_3, %c0_4] : memref<4x128xf32, #tpu.memory_space<vmem>>, vector<1x128xf32>
    %4 = vector.broadcast %3 : vector<1x128xf32> to vector<32x128xf32>
    %5 = arith.addf %2, %4 : vector<32x128xf32>
    %6 = arith.truncf %5 : vector<32x128xf32> to vector<32x128xbf16>
    %c0_5 = arith.constant 0 : index
    %c0_6 = arith.constant 0 : index
    %7 = vector.load %arg3[%c0_5, %c0_6] : memref<128x128xbf16, #tpu.memory_space<vmem>>, vector<128x128xbf16>
    %cst_7 = arith.constant dense<0.000000e+00> : vector<32x128xf32>
    %8 = tpu.matmul %6, %7, %cst_7 {dimension_numbers = #tpu.dot_dimension_numbers<[1], [0], [0], [1], [0, 0, 1, 1], [], []>} : vector<32x128xbf16>, vector<128x128xbf16>, vector<32x128xf32> -> vector<32x128xf32>
    %c1 = arith.constant 1 : index
    %c0_8 = arith.constant 0 : index
    %9 = vector.load %arg6[%c1, %c0_8] : memref<4x128xf32, #tpu.memory_space<vmem>>, vector<1x128xf32>
    %10 = vector.broadcast %9 : vector<1x128xf32> to vector<32x128xf32>
    %11 = arith.addf %8, %10 : vector<32x128xf32>
    %cst_9 = arith.constant 0.000000e+00 : f32
    %12 = vector.broadcast %cst_9 : f32 to vector<32x128xf32>
    %13 = arith.maximumf %11, %12 : vector<32x128xf32>
    %14 = arith.addf %13, %5 : vector<32x128xf32>
    %15 = arith.truncf %14 : vector<32x128xf32> to vector<32x128xbf16>
    %c0_10 = arith.constant 0 : index
    %c0_11 = arith.constant 0 : index
    %16 = vector.load %arg4[%c0_10, %c0_11] : memref<128x128xbf16, #tpu.memory_space<vmem>>, vector<128x128xbf16>
    %cst_12 = arith.constant dense<0.000000e+00> : vector<32x128xf32>
    %17 = tpu.matmul %15, %16, %cst_12 {dimension_numbers = #tpu.dot_dimension_numbers<[1], [0], [0], [1], [0, 0, 1, 1], [], []>} : vector<32x128xbf16>, vector<128x128xbf16>, vector<32x128xf32> -> vector<32x128xf32>
    %c2 = arith.constant 2 : index
    %c0_13 = arith.constant 0 : index
    %18 = vector.load %arg6[%c2, %c0_13] : memref<4x128xf32, #tpu.memory_space<vmem>>, vector<1x128xf32>
    %19 = vector.broadcast %18 : vector<1x128xf32> to vector<32x128xf32>
    %20 = arith.addf %17, %19 : vector<32x128xf32>
    %cst_14 = arith.constant 0.000000e+00 : f32
    %21 = vector.broadcast %cst_14 : f32 to vector<32x128xf32>
    %22 = arith.maximumf %20, %21 : vector<32x128xf32>
    %23 = arith.addf %22, %14 : vector<32x128xf32>
    %24 = arith.truncf %23 : vector<32x128xf32> to vector<32x128xbf16>
    %c0_15 = arith.constant 0 : index
    %c0_16 = arith.constant 0 : index
    %25 = vector.load %arg5[%c0_15, %c0_16] : memref<128x128xbf16, #tpu.memory_space<vmem>>, vector<128x128xbf16>
    %cst_17 = arith.constant dense<0.000000e+00> : vector<32x128xf32>
    %26 = tpu.matmul %24, %25, %cst_17 {dimension_numbers = #tpu.dot_dimension_numbers<[1], [0], [0], [1], [0, 0, 1, 1], [], []>} : vector<32x128xbf16>, vector<128x128xbf16>, vector<32x128xf32> -> vector<32x128xf32>
    %c3 = arith.constant 3 : index
    %c0_18 = arith.constant 0 : index
    %27 = vector.load %arg6[%c3, %c0_18] : memref<4x128xf32, #tpu.memory_space<vmem>>, vector<1x128xf32>
    %28 = vector.broadcast %27 : vector<1x128xf32> to vector<32x128xf32>
    %29 = arith.addf %26, %28 : vector<32x128xf32>
    %c0_19 = arith.constant 0 : index
    %c0_20 = arith.constant 0 : index
    %30 = vector.load %arg7[%c0_19, %c0_20] : memref<32x128xf32, #tpu.memory_space<vmem>>, vector<32x128xf32>
    tpu.vector_store %arg7[%c0_19, %c0_20], %29 {strides = array<i32>} : memref<32x128xf32, #tpu.memory_space<vmem>>, vector<32x128xf32>,
    return
  }
  func.func @transform_0(%arg0: i32) -> (i32, i32) {
    %c0_i32 = arith.constant 0 : i32
    %c0_i32_0 = arith.constant 0 : i32
    return %arg0, %c0_i32 : i32, i32
  }
  func.func @transform_1(%arg0: i32) -> (i32, i32) {
    %c0_i32 = arith.constant 0 : i32
    %c0_i32_0 = arith.constant 0 : i32
    %c0_i32_1 = arith.constant 0 : i32
    return %c0_i32, %c0_i32_0 : i32, i32
  }
  func.func @transform_2(%arg0: i32) -> (i32, i32) {
    %c0_i32 = arith.constant 0 : i32
    %c0_i32_0 = arith.constant 0 : i32
    %c0_i32_1 = arith.constant 0 : i32
    return %c0_i32, %c0_i32_0 : i32, i32
  }
  func.func @transform_3(%arg0: i32) -> (i32, i32) {
    %c0_i32 = arith.constant 0 : i32
    %c0_i32_0 = arith.constant 0 : i32
    %c0_i32_1 = arith.constant 0 : i32
    return %c0_i32, %c0_i32_0 : i32, i32
  }
  func.func @transform_4(%arg0: i32) -> (i32, i32) {
    %c0_i32 = arith.constant 0 : i32
    %c0_i32_0 = arith.constant 0 : i32
    %c0_i32_1 = arith.constant 0 : i32
    return %c0_i32, %c0_i32_0 : i32, i32
  }
  func.func @transform_5(%arg0: i32) -> (i32, i32) {
    %c0_i32 = arith.constant 0 : i32
    %c0_i32_0 = arith.constant 0 : i32
    %c0_i32_1 = arith.constant 0 : i32
    return %c0_i32, %c0_i32_0 : i32, i32
  }
  func.func @transform_6(%arg0: i32) -> (i32, i32) {
    %c0_i32 = arith.constant 0 : i32
    %c0_i32_0 = arith.constant 0 : i32
    return %arg0, %c0_i32 : i32, i32
  }
}

</mosaic_0001>

<bundles_post_ra>
// kernel: tpu_custom_call.1
= control target key start
LH: loop header
LB: loop body
LE: loop exit
PB: predicated region body
PF: predicated region fallthrough
CT: control target
= control target key end

     0   :  { %11 = vsyncpa [#allocation3], 0  ;;  %s1849_s0 = inlined_call_operand.hbm [shape: bf16[64,128], index: 0, kind: input, shape index: {}]   ;;  %s1850_s1 = inlined_call_operand.hbm [shape: bf16[128,128], index: 1, kind: input, shape index: {}]   ;;  %s1851_s2 = inlined_call_operand.hbm [shape: bf16[128,128], index: 2, kind: input, shape index: {}]   ;;  %s1852_s3 = inlined_call_operand.hbm [shape: bf16[128,128], index: 3, kind: input, shape index: {}]   ;;  %s1853_s4 = inlined_call_operand.hbm [shape: bf16[128,128], index: 4, kind: input, shape index: {}]   ;;  %s1854_s5 = inlined_call_operand.vmem [shape: f32[4,128], index: 5, kind: input, shape index: {}]   ;;  %s1855_s6 = inlined_call_operand.hbm [shape: f32[64,128], index: 6, kind: output, shape index: {}]  }
   0x1   :  { %13 = vsyncpa [#allocation3 + $0x1], 0 }
   0x2   :  { %14 = vsyncpa [#allocation6], 0 }
   0x3   :  { %15 = vsyncpa [#allocation9], 0 }
   0x4   :  { %16 = vsyncpa [#allocation4], 0 }
   0x5   :  { %18 = vsyncpa [#allocation4 + $0x1], 0  ;;  %s1540_s21 = smov 0   ;;  %s1542_s22 = smov 0  }
   0x6   :  { %s1544_s23 = smov 0   ;;  %s1546_s24 = smov 0  }
   0x7 LB: > { %s1561_s25 = sadd.s32 4294967295, %s1493_s24   ;;  %s970_s26 = sadd.s32 4294967294, %s1493_s24   ;;  %s1493_s24 = sphi %s1546_s24, %s1878_s24   ;;  %s1489_s23 = sphi %s1544_s23, %s1877_s23   ;;  %s1485_s22 = sphi %s1542_s22, %s1876_s22   ;;  %s1481_s21 = sphi %s1540_s21, %s1875_s21  }
   0x8   : > { %p44_p0 = scmp.ne.s32.totalorder %s1485_s22, %s1481_s21  ;;  %p1856_p1 = scmp.eq.s32.totalorder %s1561_s25, 0 }
   0x9   : > { %p179_p3 = scmp.eq.s32.totalorder %s970_s26, 1  ;;  %p971_p5 = scmp.ge.s32.totalorder %s1493_s24, 1 }
   0xa   : > { %p1570_p4 = por %p1856_p1, %p44_p0  ;;  %p186_p7 = scmp.lt.s32.totalorder %s1493_s24, 3 }
   0xb   : > { %p1575_p6 = por %p179_p3, %p44_p0  ;;  %s1495_s30 = smov [#allocation5]  }
   0xc   : > { %s1859_s27 = scalar_select %p1570_p4, 1, 0 }
   0xd   : > { %s1860_s28 = scalar_select %p1575_p6, 1, 0 }
   0xe   : > { %p1580_p8 = pnand %p971_p5, %p186_p7  ;;  %s198_s7 = sshll.u32 %s1495_s30, 4  ;;  %s1584_s7 = int_to_ptr.vmem [resolvable:$true] %s198_s7 }
   0xf   : > { %s1496_s9 = smov [#allocation8]   ;;  %s1497_s11 = smov [#allocation7]  }
  0x10   : > { %s1861_s29 = scalar_select %p1580_p8, 1, 0 }
  0x11   : > { %p1172_p9 = pneg %p1580_p8  ;;  %s224_s10 = sshll.u32 %s1496_s9, 4  ;;  %s1595_s10 = int_to_ptr.vmem [resolvable:$true] %s224_s10 }
  0x12   : > { %s1597_s12 = sshll.u32 %s1497_s11, 4  ;;  %s1277_s15 = scalar_lea.hbm %s1850_s1, 1024  ;;  %s212_s12 = int_to_ptr.vmem [resolvable:$true] %s1597_s12 }
  0x13   : > { %p1591_p11 = pnand %p1172_p9, %p1856_p1  ;;  %p1278_p12 = scmp.ne.s32.totalorder %s1850_s1, %s1277_s15 }
  0x14   : > { %p1284_p5 = scmp.lt.u32.totalorder %s1277_s15, %s1850_s1 }
  0x15   : > { %p1607_p13 = pneg %p1591_p11 }
  0x17   : > { %p1280_p0 = pnand %p1607_p13, %p1278_p12 }
  0x19   : > { %p1281_p3 = pneg %p1280_p0 }
  0x1b   : > { %p1286_p7 = pnand %p1284_p5, %p1281_p3 }
  0x1d   : > { %1289 = shalt.err (!%p1286_p7)
}
  0x1e   : > { %s1290_s26 = scalar_lea.vmem %s1584_s7, 1024  ;;  %p1298_p2 = scmp.lt.s32.totalorder %s1584_s7, %s1584_s7 }
  0x1f   : > { %p1291_p9 = scmp.ne.s32.totalorder %s1584_s7, %s1290_s26  ;;  %p1299_p6 = scmp.lt.s32.totalorder %s1290_s26, %s1290_s26 }
  0x21   : > { %p1293_p10 = pnand %p1291_p9, %p1607_p13  ;;  %p1300_p12 = por %p1299_p6, %p1298_p2 }
  0x23   : > { %p1294_p1 = pneg %p1293_p10 }
  0x25   : > { %p1301_p0 = pnand %p1300_p12, %p1294_p1 }
  0x27   : > { %1304 = shalt.err (!%p1301_p0)
}
  0x28   : > { %s1498_s30 = smov 64   ;;  %s1499_s9 = smov 4  }
  0x29   : > { %1175 = dma.hbm_to_vmem [thread:$0]  (!%p1591_p11), %s1850_s1, 1024, %s1584_s7, [#allocation6], %s1498_s30, %s1498_s30, %s1499_s9  }
  0x2a   : > { %s1305_s16 = scalar_lea.hbm %s1852_s3, 1024 }
  0x2b   : > { %p1306_p1 = scmp.ne.s32.totalorder %s1852_s3, %s1305_s16  ;;  %p1312_p10 = scmp.lt.u32.totalorder %s1305_s16, %s1852_s3 }
  0x2d   : > { %p1308_p2 = pnand %p1306_p1, %p1607_p13 }
  0x2f   : > { %p1309_p6 = pneg %p1308_p2 }
  0x31   : > { %p1314_p3 = pnand %p1312_p10, %p1309_p6 }
  0x33   : > { %1317 = shalt.err (!%p1314_p3)
}
  0x34   : > { %s1318_s7 = scalar_lea.vmem %s1595_s10, 1024  ;;  %p1326_p12 = scmp.lt.s32.totalorder %s1595_s10, %s1595_s10 }
  0x35   : > { %p1319_p5 = scmp.ne.s32.totalorder %s1595_s10, %s1318_s7  ;;  %p1327_p0 = scmp.lt.s32.totalorder %s1318_s7, %s1318_s7 }
  0x37   : > { %p1321_p7 = pnand %p1319_p5, %p1607_p13  ;;  %p1328_p1 = por %p1327_p0, %p1326_p12 }
  0x39   : > { %p1322_p9 = pneg %p1321_p7 }
  0x3b   : > { %p1329_p2 = pnand %p1328_p1, %p1322_p9 }
  0x3d   : > { %1332 = shalt.err (!%p1329_p2)
}
  0x3e   : > { %1181 = dma.hbm_to_vmem [thread:$0]  (!%p1591_p11), %s1852_s3, 1024, %s1595_s10, [#allocation9], %s1498_s30, %s1498_s30, %s1499_s9  }
  0x3f   : > { %s1333_s16 = scalar_lea.hbm %s1851_s2, 1024 }
  0x40   : > { %p1334_p6 = scmp.ne.s32.totalorder %s1851_s2, %s1333_s16  ;;  %p1340_p5 = scmp.lt.u32.totalorder %s1333_s16, %s1851_s2 }
  0x42   : > { %p1336_p10 = pnand %p1334_p6, %p1607_p13 }
  0x44   : > { %p1337_p3 = pneg %p1336_p10 }
  0x46   : > { %p1342_p7 = pnand %p1340_p5, %p1337_p3 }
  0x48   : > { %1345 = shalt.err (!%p1342_p7)
}
  0x49   : > { %s1346_s7 = scalar_lea.vmem %s212_s12, 1024  ;;  %p1354_p1 = scmp.lt.s32.totalorder %s212_s12, %s212_s12 }
  0x4a   : > { %p1347_p9 = scmp.ne.s32.totalorder %s212_s12, %s1346_s7  ;;  %p1355_p2 = scmp.lt.s32.totalorder %s1346_s7, %s1346_s7 }
  0x4c   : > { %p1349_p12 = pnand %p1347_p9, %p1607_p13  ;;  %p1356_p4 = por %p1355_p2, %p1354_p1 }
  0x4e   : > { %p1350_p0 = pneg %p1349_p12 }
  0x50   : > { %p1357_p8 = pnand %p1356_p4, %p1350_p0 }
  0x52   : > { %1360 = shalt.err (!%p1357_p8)
}
  0x53   : > { %1178 = dma.hbm_to_vmem [thread:$0]  (!%p1591_p11), %s1851_s2, 1024, %s212_s12, [#allocation6], %s1498_s30, %s1498_s30, %s1499_s9  }
  0x54   : > { %s1500_s13 = smov [#allocation10]   ;;  %s1361_s17 = scalar_lea.hbm %s1853_s4, 1024 }
  0x55   : > { %s237_s14 = sshll.u32 %s1500_s13, 4  ;;  %p1362_p4 = scmp.ne.s32.totalorder %s1853_s4, %s1361_s17  ;;  %s238_s14 = int_to_ptr.vmem [resolvable:$true] %s237_s14 }
  0x56   : > { %p1368_p10 = scmp.lt.u32.totalorder %s1361_s17, %s1853_s4 }
  0x57   : > { %p1364_p8 = pnand %p1362_p4, %p1607_p13 }
  0x59   : > { %p1365_p6 = pneg %p1364_p8 }
  0x5b   : > { %p1370_p3 = pnand %p1368_p10, %p1365_p6 }
  0x5d   : > { %1373 = shalt.err (!%p1370_p3)
}
  0x5e   : > { %s1374_s12 = scalar_lea.vmem %s238_s14, 1024  ;;  %p1382_p12 = scmp.lt.s32.totalorder %s238_s14, %s238_s14 }
  0x5f   : > { %p1375_p5 = scmp.ne.s32.totalorder %s238_s14, %s1374_s12  ;;  %p1383_p0 = scmp.lt.s32.totalorder %s1374_s12, %s1374_s12 }
  0x61   : > { %p1377_p7 = pnand %p1375_p5, %p1607_p13  ;;  %p1384_p1 = por %p1383_p0, %p1382_p12 }
  0x63   : > { %p1378_p9 = pneg %p1377_p7 }
  0x65   : > { %p1385_p2 = pnand %p1384_p1, %p1378_p9 }
  0x67   : > { %1388 = shalt.err (!%p1385_p2)
}
  0x68   : > { %1184 = dma.hbm_to_vmem [thread:$0]  (!%p1591_p11), %s1853_s4, 1024, %s238_s14, [#allocation9], %s1498_s30, %s1498_s30, %s1499_s9  }
  0x69   : > { %s1701_s18 = sadd.s32 1, %s1493_s24   ;;  %s31_s8 = sadd.s32 1, %s1489_s23 }
  0x6a   : > { %s28_s13 = ssub.s32 %s1493_s24, %s1701_s18  ;;  %p38_p13 = scmp.ne.s32.totalorder %s1489_s23, %s1485_s22 }
  0x6b   : > { %p29_p4 = scmp.eq.s32.totalorder %s28_s13, 0  ;;  %p39_p8 = scmp.eq.s32.totalorder %s1493_s24, 0 }
  0x6c   : > { %p1864_p6 = scmp.eq.s32.totalorder %s1561_s25, 1  ;;  %p1197_p3 = scmp.lt.s32.totalorder %s1493_s24, 2 }
  0x6d   : > { %s1717_s16 = scalar_select %p29_p4, %s1489_s23, %s31_s8  }
  0x6e   : > { %p1711_p10 = por %p1864_p6, %p38_p13  ;;  %p40_p5 = por %p39_p8, %p38_p13 }
  0x6f   : > { %s254_s17 = sand.u32 1, %s1489_s23   ;;  %s1030_s14 = sshll.u32 %s1493_s24, 8 }
  0x70   : > { %s977_s19 = sshll.u32 %s254_s17, 4  ;;  %s1724_s7 = scalar_lea.hbm %s1849_s0, %s1030_s14 }
  0x71   : > { %s258_s12 = scalar_lea.vmem [#allocation2], %s977_s19  ;;  %p1728_p11 = pnand %p1197_p3, %p40_p5 }
  0x72   : > { %s265_s10 = sshll.u32 %s258_s12, 4  ;;  %s1732_s8 = scalar_lea.sflag [#allocation3], %s254_s17  ;;  %s1726_s10 = int_to_ptr.vmem [resolvable:$true] %s265_s10 }
  0x73   : > { %s1389_s13 = scalar_lea.hbm %s1724_s7, 256  ;;  %p1391_p9 = pneg %p1728_p11 }
  0x74   : > { %p1390_p7 = scmp.ne.s32.totalorder %s1724_s7, %s1389_s13  ;;  %s1394_s20 = scalar_lea.hbm %s1849_s0, 512 }
  0x75   : > { %p1395_p1 = scmp.lt.u32.totalorder %s1724_s7, %s1849_s0  ;;  %p1396_p2 = scmp.lt.u32.totalorder %s1394_s20, %s1389_s13 }
  0x76   : > { %p1392_p12 = pnand %p1391_p9, %p1390_p7  ;;  %p1398_p4 = scmp.lt.u32.totalorder %s1389_s13, %s1724_s7 }
  0x77   : > { %p1397_p13 = por %p1396_p2, %p1395_p1 }
  0x78   : > { %p1393_p0 = pneg %p1392_p12 }
  0x79   : > { %p1399_p8 = por %p1398_p4, %p1397_p13 }
  0x7b   : > { %p1400_p6 = pnand %p1399_p8, %p1393_p0 }
  0x7d   : > { %1403 = shalt.err (!%p1400_p6)
}
  0x7e   : > { %s1404_s17 = scalar_lea.vmem %s1726_s10, 256  ;;  %s1501_s19 = smov [#allocation2]  }
  0x7f   : > { %p1405_p3 = scmp.ne.s32.totalorder %s1726_s10, %s1404_s17  ;;  %s1409_s14 = sshll.u32 %s1501_s19, 4  ;;  %s1410_s14 = int_to_ptr.vmem [resolvable:$false] %s1409_s14 }
  0x80   : > { %s1411_s26 = scalar_lea.vmem %s1410_s14, 512  ;;  %p1412_p12 = scmp.lt.s32.totalorder %s1726_s10, %s1410_s14 }
  0x81   : > { %p1407_p5 = pnand %p1405_p3, %p1391_p9  ;;  %p1413_p1 = scmp.lt.s32.totalorder %s1411_s26, %s1404_s17 }
  0x83   : > { %p1408_p7 = pneg %p1407_p5  ;;  %p1414_p2 = por %p1413_p1, %p1412_p12 }
  0x85   : > { %p1415_p13 = pnand %p1414_p2, %p1408_p7 }
  0x87   : > { %1418 = shalt.err (!%p1415_p13)
}
  0x88   : > { %1188 = dma.hbm_to_vmem [thread:$0]  (!%p1728_p11), %s1724_s7, 256, %s1726_s10, %s1732_s8, %s1498_s30, %s1498_s30, %s1499_s9  }
  0x89   : > { %p1867_p9 = scmp.ne.s32.totalorder %s1861_s29, 0 }
  0x8a   : > { %s1766_s13 = sand.u32 (!%p1867_p9), 1, %s1485_s22   ;;  %p1868_p0 = scmp.ne.s32.totalorder (!%p1867_p9), %s1859_s27, 0 }
  0x8b   : > { %277 = sbr.rel (%p1867_p9) target bundleno = 1087 (0x43f), region = 44  ;;  %s981_s20 = sshll.u32 (!%p1867_p9), %s1766_s13, 4 }
  0x8c   : > { %s280_s12 = scalar_lea.sflag (!%p1867_p9), [#allocation3], %s1766_s13  ;;  %s1770_s17 = scalar_lea.vmem (!%p1867_p9), [#allocation2], %s981_s20 }
  0x92   : > { %1464 = dma.done.wait (%p1868_p0), %s280_s12, 256  }
  0x93   : > { %1466 = vsyncadd (%p1868_p0), %s280_s12, 4294967040  ;;  %p1869_p11 = scmp.eq.s32.totalorder %s1561_s25, 0 }
  0x95   : > { %1468 = dma.done.wait (%p1869_p11), [#allocation6], 2048   ;;  %p1870_p4 = pmov %p1869_p11 }
  0x97   : > { %1470 = vsyncadd (%p1870_p4), [#allocation6], 4294965248  ;;  %p1871_p8 = pmov %p1870_p4 }
  0x98   : > { %p1872_p6 = pmov %p1870_p4 }
  0x99   : > { %1472 = dma.done.wait (%p1871_p8), [#allocation9], 2048  }
  0x9a   : > { %1474 = vsyncadd (%p1872_p6), [#allocation9], 4294965248  ;;  %v1243_v0 = vld [vmem:[#allocation5] sm:$0xff]   ;;  %v1244_v1 = vld [vmem:[#allocation5 + $0x8] sm:$0xff]   ;;  %s986_s11 = sshll.u32 %s1766_s13, 5  ;;  %s1031_s20 = sshll.u32 %s1561_s25, 9 }
  0x9b   : > { %1072 = vmatprep.subr.bf16.mxu0 %v1243_v0  ;;  %v1245_v2 = vld [vmem:[#allocation5 + $0x10] sm:$0xff]   ;;  %v1246_v3 = vld [vmem:[#allocation5 + $0x18] sm:$0xff]   ;;  %v1253_v5 = vld [vmem:[#allocation7] sm:$0xff]   ;;  %s327_s14 = scalar_lea.vmem [#allocation11], %s986_s11  ;;  %s1805_s27 = scalar_lea.hbm %s1855_s6, %s1031_s20 }
  0x9c   : > { %1073 = vmatpush3.bf16.msra.mxu0 %v1243_v0  ;;  %v1251_v4 = vld [vmem:[%s1770_s17] sm:$0xff]   ;;  %v1254_v6 = vld [vmem:[#allocation7 + $0x8] sm:$0xff]   ;;  %1092 = vmatprep.subr.bf16.mxu1 %v1253_v5  ;;  %v1256_v10 = vld [vmem:[#allocation7 + $0x18] sm:$0xff]   ;;  %s859_s26 = sshll.u32 %s327_s14, 4  ;;  %s846_s25 = scalar_lea.sflag [#allocation4], %s1766_s13  ;;  %s1800_s26 = int_to_ptr.vmem [resolvable:$true] %s859_s26 }
  0x9d   : > { %1074 = vmatprep.subr.bf16.mxu0 %v1244_v1  ;;  %1088 = vmatprep.mubr.bf16.mxu0 %v1251_v4  ;;  %v1247_v7 = vld [vmem:[#allocation5 + $0x20] sm:$0xff]   ;;  %v1255_v8 = vld [vmem:[#allocation7 + $0x10] sm:$0xff]   ;;  %v1248_v9 = vld [vmem:[#allocation5 + $0x28] sm:$0xff]   ;;  %s1419_s29 = scalar_lea.vmem %s1800_s26, 512  ;;  %s1502_s30 = smov [#allocation11]  }
  0x9e   : > { %1093 = vmatpush3.bf16.msra.mxu1 %v1253_v5  ;;  %v1249_v11 = vld [vmem:[#allocation5 + $0x30] sm:$0xff]   ;;  %v1257_v12 = vld [vmem:[#allocation7 + $0x20] sm:$0xff]   ;;  %v1250_v13 = vld [vmem:[#allocation5 + $0x38] sm:$0xff]   ;;  %p1420_p3 = scmp.ne.s32.totalorder %s1800_s26, %s1419_s29  ;;  %s1423_s9 = sshll.u32 %s1502_s30, 4  ;;  %s1424_s9 = int_to_ptr.vmem [resolvable:$false] %s1423_s9 }
  0x9f   : > { %1094 = vmatprep.subr.bf16.mxu1 %v1254_v6  ;;  %v1258_v14 = vld [vmem:[#allocation7 + $0x28] sm:$0xff]   ;;  %v1259_v16 = vld [vmem:[#allocation7 + $0x30] sm:$0xff]   ;;  %v1260_v17 = vld [vmem:[#allocation7 + $0x38] sm:$0xff]   ;;  %s1425_s7 = scalar_lea.vmem %s1424_s9, 1024  ;;  %p1426_p12 = scmp.lt.s32.totalorder %s1800_s26, %s1424_s9 }
  0xa0   : > { %1075 = vmatpush3.bf16.msra.mxu0 %v1244_v1  ;;  %v1252_v15 = vld [vmem:[%s1770_s17 + $0x8] sm:$0xff]   ;;  %v1261_v18 = vld [vmem:[#allocation8] sm:$0xff]   ;;  %v1263_v20 = vld [vmem:[#allocation8 + $0x10] sm:$0xff]   ;;  %p1421_p5 = pnand %p1420_p3, %p1711_p10  ;;  %p1427_p1 = scmp.lt.s32.totalorder %s1425_s7, %s1419_s29 }
  0xa1   : > { %1076 = vmatprep.subr.bf16.mxu0 %v1245_v2  ;;  %v1262_v19 = vld [vmem:[#allocation8 + $0x8] sm:$0xff]   ;;  %v1264_v21 = vld [vmem:[#allocation8 + $0x18] sm:$0xff]   ;;  %v1265_v22 = vld [vmem:[#allocation8 + $0x20] sm:$0xff]  }
  0xa2   : > { %1095 = vmatpush3.bf16.msra.mxu1 %v1254_v6  ;;  %v987_v24 = vld [vmem:[%s1854_s5] ss:$0 sm:$0xff]  ;;  %v1266_v34 = vld [vmem:[#allocation8 + $0x28] sm:$0xff]   ;;  %v1267_v35 = vld [vmem:[#allocation8 + $0x30] sm:$0xff]   ;;  %p1422_p7 = pneg %p1421_p5  ;;  %p1428_p2 = por %p1427_p1, %p1426_p12 }
  0xa3   : > { %1096 = vmatprep.subr.bf16.mxu1 %v1255_v8  ;;  %v1268_v36 = vld [vmem:[#allocation8 + $0x38] sm:$0xff]   ;;  %v1269_v37 = vld [vmem:[#allocation10] sm:$0xff]   ;;  %v1270_v38 = vld [vmem:[#allocation10 + $0x8] sm:$0xff]  }
  0xa4   : > { %1077 = vmatpush3.bf16.msra.mxu0 %v1245_v2  ;;  %v1271_v39 = vld [vmem:[#allocation10 + $0x10] sm:$0xff]   ;;  %v1272_v40 = vld [vmem:[#allocation10 + $0x18] sm:$0xff]   ;;  %v1273_v41 = vld [vmem:[#allocation10 + $0x20] sm:$0xff]   ;;  %p1429_p13 = pnand %p1428_p2, %p1422_p7 }
  0xa5   : > { %1078 = vmatprep.subr.bf16.mxu0 %v1246_v3  ;;  %v998_v42 = vld [vmem:[%s1854_s5 + $0x1] ss:$0 sm:$0xff]  ;;  %v1274_v61 = vld [vmem:[#allocation10 + $0x28] sm:$0xff]   ;;  %v1275_v62 = vld [vmem:[#allocation10 + $0x30] sm:$0xff]  }
  0xa6   : > { %1097 = vmatpush3.bf16.msra.mxu1 %v1255_v8  ;;  %v1276_v63 = vld [vmem:[#allocation10 + $0x38] sm:$0xff]   ;;  %v1007_v0 = vld [vmem:[%s1854_s5 + $0x2] ss:$0 sm:$0xff] }
  0xa7   : > { %1098 = vmatprep.subr.bf16.mxu1 %v1256_v10 }
  0xa8   : > { %1079 = vmatpush3.bf16.msra.mxu0 %v1246_v3 }
  0xa9   : > { %1080 = vmatprep.subr.bf16.mxu0 %v1247_v7 }
  0xaa   : > { %1099 = vmatpush3.bf16.msra.mxu1 %v1256_v10 }
  0xab   : > { %1100 = vmatprep.subr.bf16.mxu1 %v1257_v12 }
  0xac   : > { %1081 = vmatpush3.bf16.msra.mxu0 %v1247_v7 }
  0xad   : > { %1082 = vmatprep.subr.bf16.mxu0 %v1248_v9 }
  0xae   : > { %1101 = vmatpush3.bf16.msra.mxu1 %v1257_v12 }
  0xaf   : > { %1102 = vmatprep.subr.bf16.mxu1 %v1258_v14 }
  0xb0   : > { %1083 = vmatpush3.bf16.msra.mxu0 %v1248_v9 }
  0xb1   : > { %1084 = vmatprep.subr.bf16.mxu0 %v1249_v11 }
  0xb2   : > { %1103 = vmatpush3.bf16.msra.mxu1 %v1258_v14 }
  0xb3   : > { %1104 = vmatprep.subr.bf16.mxu1 %v1259_v16 }
  0xb4   : > { %1085 = vmatpush3.bf16.msra.mxu0 %v1249_v11 }
  0xb5   : > { %1086 = vmatprep.subr.bf16.mxu0 %v1250_v13 }
  0xb6   : > { %1105 = vmatpush3.bf16.msra.mxu1 %v1259_v16 }
  0xb7   : > { %1106 = vmatprep.subr.bf16.mxu1 %v1260_v17 }
  0xb8   : > { %1087 = vmatpush3.bf16.msra.mxu0 %v1250_v13 }
  0xb9   : > { %1112 = vmatprep.subr.bf16.mxu0 %v1261_v18 }
  0xba   : > { %1107 = vmatpush3.bf16.msra.mxu1 %v1260_v17 }
  0xbb   : > { %1089 = vmatmul.mubr.bf16.vlgmr.msra.gmra.mrb[0].mxu0 %v1252_v15  ;;  %1132 = vmatprep.subr.bf16.mxu1 %v1269_v37 }
  0xbc   : > { %1113 = vmatpush3.bf16.msra.mxu0 %v1261_v18 }
  0xbd   : > { %1114 = vmatprep.subr.bf16.mxu0 %v1262_v19 }
  0xc0   : > { %1115 = vmatpush3.bf16.msra.mxu0 %v1262_v19  ;;  %v1016_v19 = vld [vmem:[%s1854_s5 + $0x3] ss:$0 sm:$0xff] }
  0xc1   : > { %1116 = vmatprep.subr.bf16.mxu0 %v1263_v20 }
  0xc4   : > { %1117 = vmatpush3.bf16.msra.mxu0 %v1263_v20 }
  0xc5   : > { %1118 = vmatprep.subr.bf16.mxu0 %v1264_v21 }
  0xc8   : > { %1119 = vmatpush3.bf16.msra.mxu0 %v1264_v21 }
  0xc9   : > { %1120 = vmatprep.subr.bf16.mxu0 %v1265_v22 }
  0xcc   : > { %1121 = vmatpush3.bf16.msra.mxu0 %v1265_v22 }
  0xcd   : > { %1122 = vmatprep.subr.bf16.mxu0 %v1266_v34 }
  0xd0   : > { %1123 = vmatpush3.bf16.msra.mxu0 %v1266_v34 }
  0xd1   : > { %1124 = vmatprep.subr.bf16.mxu0 %v1267_v35 }
  0xd4   : > { %1125 = vmatpush3.bf16.msra.mxu0 %v1267_v35 }
  0xd5   : > { %1126 = vmatprep.subr.bf16.mxu0 %v1268_v36 }
  0xd8   : > { %1127 = vmatpush3.bf16.msra.mxu0 %v1268_v36 }
 0x18e   : > { %v1090_v23 = vpop.f32.mrb[0].mxu0 }
 0x18f   : > { %v450_v25 = vpop.f32.mrb[1].mxu0  ;;  %v459_v31 = vadd.f32 %v1090_v23, %v987_v24 }
 0x190   : > { %v1091_v26 = vpop.f32.mrb[2].mxu0  ;;  %v451_v29 = vadd.f32 %v987_v24, %v450_v25 }
 0x191   : > { %v462_v27 = vadd.f32 %v1091_v26, %v987_v24  ;;  %v453_v28 = vpop.f32.mrb[3].mxu0 }
 0x192   : > { %v454_v30 = vadd.f32 %v987_v24, %v453_v28 }
 0x193   : > { %v466_v33 = vpack.c.bf16 %v462_v27, %v459_v31 }
 0x194   : > { %v465_v32 = vpack.c.bf16 %v454_v30, %v451_v29 }
 0x196   : > { %1108 = vmatprep.mubr.bf16.mxu1 %v465_v32 }
 0x197   : > { %1109 = vmatmul.mubr.bf16.vlgmr.msra.gmra.mrb[0].mxu1 %v466_v33 }
 0x198   : > { %1133 = vmatpush3.bf16.msra.mxu1 %v1269_v37 }
 0x199   : > { %1134 = vmatprep.subr.bf16.mxu1 %v1270_v38 }
 0x19c   : > { %1135 = vmatpush3.bf16.msra.mxu1 %v1270_v38 }
 0x19d   : > { %1136 = vmatprep.subr.bf16.mxu1 %v1271_v39 }
 0x1a0   : > { %1137 = vmatpush3.bf16.msra.mxu1 %v1271_v39 }
 0x1a1   : > { %1138 = vmatprep.subr.bf16.mxu1 %v1272_v40 }
 0x1a4   : > { %1139 = vmatpush3.bf16.msra.mxu1 %v1272_v40 }
 0x1a5   : > { %1140 = vmatprep.subr.bf16.mxu1 %v1273_v41 }
 0x1a8   : > { %1141 = vmatpush3.bf16.msra.mxu1 %v1273_v41 }
 0x1a9   : > { %1142 = vmatprep.subr.bf16.mxu1 %v1274_v61 }
 0x1ac   : > { %1143 = vmatpush3.bf16.msra.mxu1 %v1274_v61 }
 0x1ad   : > { %1144 = vmatprep.subr.bf16.mxu1 %v1275_v62 }
 0x1b0   : > { %1145 = vmatpush3.bf16.msra.mxu1 %v1275_v62 }
 0x1b1   : > { %1146 = vmatprep.subr.bf16.mxu1 %v1276_v63 }
 0x1b4   : > { %1147 = vmatpush3.bf16.msra.mxu1 %v1276_v63 }
 0x26a   : > { %v1110_v43 = vpop.f32.mrb[0].mxu1 }
 0x26b   : > { %v579_v44 = vadd.f32 %v1110_v43, %v998_v42  ;;  %v570_v45 = vpop.f32.mrb[1].mxu1 }
 0x26c   : > { %v571_v46 = vadd.f32 %v998_v42, %v570_v45  ;;  %v1111_v47 = vpop.f32.mrb[2].mxu1 }
 0x26d   : > { %v582_v48 = vadd.f32 %v1111_v47, %v998_v42  ;;  %v573_v49 = vpop.f32.mrb[3].mxu1  ;;  %v587_v52 = vmax.f32 %v579_v44, 0.0 }
 0x26e   : > { %v585_v50 = vmax.f32 %v571_v46, 0.0  ;;  %v574_v51 = vadd.f32 %v998_v42, %v573_v49 }
 0x26f   : > { %v588_v53 = vmax.f32 %v582_v48, 0.0  ;;  %v591_v58 = vadd.f32 %v587_v52, %v459_v31 }
 0x270   : > { %v586_v54 = vmax.f32 %v574_v51, 0.0  ;;  %v589_v56 = vadd.f32 %v585_v50, %v451_v29 }
 0x271   : > { %v592_v55 = vadd.f32 %v588_v53, %v462_v27 }
 0x272   : > { %v590_v57 = vadd.f32 %v586_v54, %v454_v30 }
 0x273   : > { %v594_v60 = vpack.c.bf16 %v592_v55, %v591_v58 }
 0x274   : > { %v593_v59 = vpack.c.bf16 %v590_v57, %v589_v56 }
 0x276   : > { %1128 = vmatprep.mubr.bf16.mxu0 %v593_v59 }
 0x277   : > { %1129 = vmatmul.mubr.bf16.vlgmr.msra.gmra.mrb[4].mxu0 %v594_v60 }
 0x34a   : > { %v1130_v1 = vpop.f32.mrb[4].mxu0 }
 0x34b   : > { %v707_v2 = vadd.f32 %v1130_v1, %v1007_v0  ;;  %v698_v3 = vpop.f32.mrb[5].mxu0 }
 0x34c   : > { %v699_v4 = vadd.f32 %v1007_v0, %v698_v3  ;;  %v1131_v5 = vpop.f32.mrb[6].mxu0 }
 0x34d   : > { %v715_v6 = vmax.f32 %v707_v2, 0.0  ;;  %v710_v7 = vadd.f32 %v1131_v5, %v1007_v0  ;;  %v701_v8 = vpop.f32.mrb[7].mxu0 }
 0x34e   : > { %v713_v9 = vmax.f32 %v699_v4, 0.0  ;;  %v702_v10 = vadd.f32 %v1007_v0, %v701_v8 }
 0x34f   : > { %v716_v11 = vmax.f32 %v710_v7, 0.0  ;;  %v719_v13 = vadd.f32 %v715_v6, %v591_v58 }
 0x350   : > { %v714_v12 = vmax.f32 %v702_v10, 0.0  ;;  %v717_v15 = vadd.f32 %v713_v9, %v589_v56 }
 0x351   : > { %v720_v14 = vadd.f32 %v716_v11, %v592_v55 }
 0x352   : > { %v718_v16 = vadd.f32 %v714_v12, %v590_v57 }
 0x353   : > { %v722_v17 = vpack.c.bf16 %v720_v14, %v719_v13 }
 0x354   : > { %v721_v18 = vpack.c.bf16 %v718_v16, %v717_v15 }
 0x356   : > { %1148 = vmatprep.mubr.bf16.mxu1 %v721_v18 }
 0x357   : > { %1149 = vmatmul.mubr.bf16.vlgmr.msra.gmra.mrb[4].mxu1 %v722_v17 }
 0x42a   : > { %v1150_v20 = vpop.f32.mrb[4].mxu1 }
 0x42b   : > { %v835_v21 = vadd.f32 %v1150_v20, %v1016_v19  ;;  %v826_v22 = vpop.f32.mrb[5].mxu1 }
 0x42c   : > { %v827_v23 = vadd.f32 %v1016_v19, %v826_v22  ;;  %v1151_v24 = vpop.f32.mrb[6].mxu1 }
 0x42d   : > { %843 = vst [vmem:[%s327_s14 + $0x10] sm:$0xff] %v835_v21  ;;  %v838_v25 = vadd.f32 %v1151_v24, %v1016_v19  ;;  %v829_v26 = vpop.f32.mrb[7].mxu1 }
 0x42e   : > { %841 = vst [vmem:[%s327_s14] sm:$0xff] %v827_v23  ;;  %v830_v27 = vadd.f32 %v1016_v19, %v829_v26 }
 0x42f   : > { %844 = vst [vmem:[%s327_s14 + $0x18] sm:$0xff] %v838_v25 }
 0x430   : > { %842 = vst [vmem:[%s327_s14 + $0x8] sm:$0xff] %v830_v27 }
 0x431   : > { %1432 = shalt.err (!%p1429_p13)
}
 0x432   : > { %s1433_s10 = scalar_lea.hbm %s1805_s27, 512  ;;  %s1437_s19 = scalar_lea.hbm %s1855_s6, 1024 }
 0x433   : > { %p1434_p9 = scmp.ne.s32.totalorder %s1805_s27, %s1433_s10  ;;  %p1438_p4 = scmp.lt.u32.totalorder %s1805_s27, %s1855_s6 }
 0x434   : > { %p1439_p8 = scmp.lt.u32.totalorder %s1437_s19, %s1433_s10  ;;  %p1441_p3 = scmp.lt.u32.totalorder %s1433_s10, %s1805_s27 }
 0x435   : > { %p1435_p0 = pnand %p1434_p9, %p1711_p10 }
 0x436   : > { %p1440_p6 = por %p1439_p8, %p1438_p4 }
 0x437   : > { %p1436_p11 = pneg %p1435_p0 }
 0x438   : > { %p1442_p5 = por %p1441_p3, %p1440_p6 }
 0x43a   : > { %p1443_p7 = pnand %p1442_p5, %p1436_p11 }
 0x43c   : > { %1446 = shalt.err (!%p1443_p7)
}
 0x43d   : > { %s1503_s12 = smov 128   ;;  %s1504_s17 = smov 8  }
 0x43e   : > { %1170 = dma.vmem_to_hbm [thread:$0]  (%p1711_p10), %s1800_s26, 512, %s1805_s27, %s846_s25, %s1503_s12, %s1503_s12, %s1504_s17  }
 0x43f PF: > { %s874_s29 = sand.u32 1, %s1481_s21   ;;  %p1873_p12 = scmp.ne.s32.totalorder %s1860_s28, 0 }
 0x440   : > { %p1874_p1 = scmp.ge.s32.totalorder %s1493_s24, 2  ;;  %s875_s30 = scalar_lea.sflag [#allocation4], %s874_s29 }
 0x442   : > { %p1190_p2 = pnand %p1874_p1, %p1873_p12 }
 0x444   : > { %1476 = dma.done.wait (!%p1190_p2), %s875_s30, 512  }
 0x445   : > { %1478 = vsyncadd (!%p1190_p2), %s875_s30, 4294966784  ;;  %p21_p13 = scmp.ge.s32.totalorder %s1701_s18, 4   ;;  %s1875_s21 = smov %s1485_s22 }
 0x446   : > { %s1876_s22 = smov %s1489_s23  ;;  %s1877_s23 = smov %s1717_s16 }
 0x447   : > { %s1878_s24 = smov %s1701_s18  ;;  %23 = sbr.rel (!%p21_p13) target bundleno = 7 (0x7), region = 105 }
 0x44e   :  { %880 = vsyncpa [#allocation3], 1 }
 0x44f   :  { %882 = vsyncpa [#allocation3 + $0x1], 1 }
 0x450   :  { %883 = vsyncpa [#allocation6], 1 }
 0x451   :  { %884 = vsyncpa [#allocation9], 1 }
 0x452   :  { %885 = vsyncpa [#allocation4], 1 }
 0x453   :  { %887 = vsyncpa [#allocation4 + $0x1], 1 }

// kernel: tpu_custom_call.1
= control target key start
LH: loop header
LB: loop body
LE: loop exit
PB: predicated region body
PF: predicated region fallthrough
CT: control target
= control target key end

     0   :  { %11 = vsyncpa [#allocation3], 0  ;;  %s1849_s0 = inlined_call_operand.hbm [shape: bf16[64,128], index: 0, kind: input, shape index: {}]   ;;  %s1850_s1 = inlined_call_operand.hbm [shape: bf16[128,128], index: 1, kind: input, shape index: {}]   ;;  %s1851_s2 = inlined_call_operand.hbm [shape: bf16[128,128], index: 2, kind: input, shape index: {}]   ;;  %s1852_s3 = inlined_call_operand.hbm [shape: bf16[128,128], index: 3, kind: input, shape index: {}]   ;;  %s1853_s4 = inlined_call_operand.hbm [shape: bf16[128,128], index: 4, kind: input, shape index: {}]   ;;  %s1854_s5 = inlined_call_operand.vmem [shape: f32[4,128], index: 5, kind: input, shape index: {}]   ;;  %s1855_s6 = inlined_call_operand.hbm [shape: f32[64,128], index: 6, kind: output, shape index: {}]  }
   0x1   :  { %13 = vsyncpa [#allocation3 + $0x1], 0 }
   0x2   :  { %14 = vsyncpa [#allocation6], 0 }
   0x3   :  { %15 = vsyncpa [#allocation9], 0 }
   0x4   :  { %16 = vsyncpa [#allocation4], 0 }
   0x5   :  { %18 = vsyncpa [#allocation4 + $0x1], 0  ;;  %s1540_s21 = smov 0   ;;  %s1542_s22 = smov 0  }
   0x6   :  { %s1544_s23 = smov 0   ;;  %s1546_s24 = smov 0  }
   0x7 LB: > { %s1561_s25 = sadd.s32 4294967295, %s1493_s24   ;;  %s970_s26 = sadd.s32 4294967294, %s1493_s24   ;;  %s1493_s24 = sphi %s1546_s24, %s1878_s24   ;;  %s1489_s23 = sphi %s1544_s23, %s1877_s23   ;;  %s1485_s22 = sphi %s1542_s22, %s1876_s22   ;;  %s1481_s21 = sphi %s1540_s21, %s1875_s21  }
   0x8   : > { %p44_p0 = scmp.ne.s32.totalorder %s1485_s22, %s1481_s21  ;;  %p1856_p1 = scmp.eq.s32.totalorder %s1561_s25, 0 }
   0x9   : > { %p179_p3 = scmp.eq.s32.totalorder %s970_s26, 1  ;;  %p971_p5 = scmp.ge.s32.totalorder %s1493_s24, 1 }
   0xa   : > { %p1570_p4 = por %p1856_p1, %p44_p0  ;;  %p186_p7 = scmp.lt.s32.totalorder %s1493_s24, 3 }
   0xb   : > { %p1575_p6 = por %p179_p3, %p44_p0  ;;  %s1495_s30 = smov [#allocation5]  }
   0xc   : > { %s1859_s27 = scalar_select %p1570_p4, 1, 0 }
   0xd   : > { %s1860_s28 = scalar_select %p1575_p6, 1, 0 }
   0xe   : > { %p1580_p8 = pnand %p971_p5, %p186_p7  ;;  %s198_s7 = sshll.u32 %s1495_s30, 4  ;;  %s1584_s7 = int_to_ptr.vmem [resolvable:$true] %s198_s7 }
   0xf   : > { %s1496_s9 = smov [#allocation8]   ;;  %s1497_s11 = smov [#allocation7]  }
  0x10   : > { %s1861_s29 = scalar_select %p1580_p8, 1, 0 }
  0x11   : > { %p1172_p9 = pneg %p1580_p8  ;;  %s224_s10 = sshll.u32 %s1496_s9, 4  ;;  %s1595_s10 = int_to_ptr.vmem [resolvable:$true] %s224_s10 }
  0x12   : > { %s1597_s12 = sshll.u32 %s1497_s11, 4  ;;  %s1277_s15 = scalar_lea.hbm %s1850_s1, 1024  ;;  %s212_s12 = int_to_ptr.vmem [resolvable:$true] %s1597_s12 }
  0x13   : > { %p1591_p11 = pnand %p1172_p9, %p1856_p1  ;;  %p1278_p12 = scmp.ne.s32.totalorder %s1850_s1, %s1277_s15 }
  0x14   : > { %p1284_p5 = scmp.lt.u32.totalorder %s1277_s15, %s1850_s1 }
  0x15   : > { %p1607_p13 = pneg %p1591_p11 }
  0x17   : > { %p1280_p0 = pnand %p1607_p13, %p1278_p12 }
  0x19   : > { %p1281_p3 = pneg %p1280_p0 }
  0x1b   : > { %p1286_p7 = pnand %p1284_p5, %p1281_p3 }
  0x1d   : > { %1289 = shalt.err (!%p1286_p7)
}
  0x1e   : > { %s1290_s26 = scalar_lea.vmem %s1584_s7, 1024  ;;  %p1298_p2 = scmp.lt.s32.totalorder %s1584_s7, %s1584_s7 }
  0x1f   : > { %p1291_p9 = scmp.ne.s32.totalorder %s1584_s7, %s1290_s26  ;;  %p1299_p6 = scmp.lt.s32.totalorder %s1290_s26, %s1290_s26 }
  0x21   : > { %p1293_p10 = pnand %p1291_p9, %p1607_p13  ;;  %p1300_p12 = por %p1299_p6, %p1298_p2 }
  0x23   : > { %p1294_p1 = pneg %p1293_p10 }
  0x25   : > { %p1301_p0 = pnand %p1300_p12, %p1294_p1 }
  0x27   : > { %1304 = shalt.err (!%p1301_p0)
}
  0x28   : > { %s1498_s30 = smov 64   ;;  %s1499_s9 = smov 4  }
  0x29   : > { %1175 = dma.hbm_to_vmem [thread:$0]  (!%p1591_p11), %s1850_s1, 1024, %s1584_s7, [#allocation6], %s1498_s30, %s1498_s30, %s1499_s9  }
  0x2a   : > { %s1305_s16 = scalar_lea.hbm %s1852_s3, 1024 }
  0x2b   : > { %p1306_p1 = scmp.ne.s32.totalorder %s1852_s3, %s1305_s16  ;;  %p1312_p10 = scmp.lt.u32.totalorder %s1305_s16, %s1852_s3 }
  0x2d   : > { %p1308_p2 = pnand %p1306_p1, %p1607_p13 }
  0x2f   : > { %p1309_p6 = pneg %p1308_p2 }
  0x31   : > { %p1314_p3 = pnand %p1312_p10, %p1309_p6 }
  0x33   : > { %1317 = shalt.err (!%p1314_p3)
}
  0x34   : > { %s1318_s7 = scalar_lea.vmem %s1595_s10, 1024  ;;  %p1326_p12 = scmp.lt.s32.totalorder %s1595_s10, %s1595_s10 }
  0x35   : > { %p1319_p5 = scmp.ne.s32.totalorder %s1595_s10, %s1318_s7  ;;  %p1327_p0 = scmp.lt.s32.totalorder %s1318_s7, %s1318_s7 }
  0x37   : > { %p1321_p7 = pnand %p1319_p5, %p1607_p13  ;;  %p1328_p1 = por %p1327_p0, %p1326_p12 }
  0x39   : > { %p1322_p9 = pneg %p1321_p7 }
  0x3b   : > { %p1329_p2 = pnand %p1328_p1, %p1322_p9 }
  0x3d   : > { %1332 = shalt.err (!%p1329_p2)
}
  0x3e   : > { %1181 = dma.hbm_to_vmem [thread:$0]  (!%p1591_p11), %s1852_s3, 1024, %s1595_s10, [#allocation9], %s1498_s30, %s1498_s30, %s1499_s9  }
  0x3f   : > { %s1333_s16 = scalar_lea.hbm %s1851_s2, 1024 }
  0x40   : > { %p1334_p6 = scmp.ne.s32.totalorder %s1851_s2, %s1333_s16  ;;  %p1340_p5 = scmp.lt.u32.totalorder %s1333_s16, %s1851_s2 }
  0x42   : > { %p1336_p10 = pnand %p1334_p6, %p1607_p13 }
  0x44   : > { %p1337_p3 = pneg %p1336_p10 }
  0x46   : > { %p1342_p7 = pnand %p1340_p5, %p1337_p3 }
  0x48   : > { %1345 = shalt.err (!%p1342_p7)
}
  0x49   : > { %s1346_s7 = scalar_lea.vmem %s212_s12, 1024  ;;  %p1354_p1 = scmp.lt.s32.totalorder %s212_s12, %s212_s12 }
  0x4a   : > { %p1347_p9 = scmp.ne.s32.totalorder %s212_s12, %s1346_s7  ;;  %p1355_p2 = scmp.lt.s32.totalorder %s1346_s7, %s1346_s7 }
  0x4c   : > { %p1349_p12 = pnand %p1347_p9, %p1607_p13  ;;  %p1356_p4 = por %p1355_p2, %p1354_p1 }
  0x4e   : > { %p1350_p0 = pneg %p1349_p12 }
  0x50   : > { %p1357_p8 = pnand %p1356_p4, %p1350_p0 }
  0x52   : > { %1360 = shalt.err (!%p1357_p8)
}
  0x53   : > { %1178 = dma.hbm_to_vmem [thread:$0]  (!%p1591_p11), %s1851_s2, 1024, %s212_s12, [#allocation6], %s1498_s30, %s1498_s30, %s1499_s9  }
  0x54   : > { %s1500_s13 = smov [#allocation10]   ;;  %s1361_s17 = scalar_lea.hbm %s1853_s4, 1024 }
  0x55   : > { %s237_s14 = sshll.u32 %s1500_s13, 4  ;;  %p1362_p4 = scmp.ne.s32.totalorder %s1853_s4, %s1361_s17  ;;  %s238_s14 = int_to_ptr.vmem [resolvable:$true] %s237_s14 }
  0x56   : > { %p1368_p10 = scmp.lt.u32.totalorder %s1361_s17, %s1853_s4 }
  0x57   : > { %p1364_p8 = pnand %p1362_p4, %p1607_p13 }
  0x59   : > { %p1365_p6 = pneg %p1364_p8 }
  0x5b   : > { %p1370_p3 = pnand %p1368_p10, %p1365_p6 }
  0x5d   : > { %1373 = shalt.err (!%p1370_p3)
}
  0x5e   : > { %s1374_s12 = scalar_lea.vmem %s238_s14, 1024  ;;  %p1382_p12 = scmp.lt.s32.totalorder %s238_s14, %s238_s14 }
  0x5f   : > { %p1375_p5 = scmp.ne.s32.totalorder %s238_s14, %s1374_s12  ;;  %p1383_p0 = scmp.lt.s32.totalorder %s1374_s12, %s1374_s12 }
  0x61   : > { %p1377_p7 = pnand %p1375_p5, %p1607_p13  ;;  %p1384_p1 = por %p1383_p0, %p1382_p12 }
  0x63   : > { %p1378_p9 = pneg %p1377_p7 }
  0x65   : > { %p1385_p2 = pnand %p1384_p1, %p1378_p9 }
  0x67   : > { %1388 = shalt.err (!%p1385_p2)
}
  0x68   : > { %1184 = dma.hbm_to_vmem [thread:$0]  (!%p1591_p11), %s1853_s4, 1024, %s238_s14, [#allocation9], %s1498_s30, %s1498_s30, %s1499_s9  }
  0x69   : > { %s1701_s18 = sadd.s32 1, %s1493_s24   ;;  %s31_s8 = sadd.s32 1, %s1489_s23 }
  0x6a   : > { %s28_s13 = ssub.s32 %s1493_s24, %s1701_s18  ;;  %p38_p13 = scmp.ne.s32.totalorder %s1489_s23, %s1485_s22 }
  0x6b   : > { %p29_p4 = scmp.eq.s32.totalorder %s28_s13, 0  ;;  %p39_p8 = scmp.eq.s32.totalorder %s1493_s24, 0 }
  0x6c   : > { %p1864_p6 = scmp.eq.s32.totalorder %s1561_s25, 1  ;;  %p1197_p3 = scmp.lt.s32.totalorder %s1493_s24, 2 }
  0x6d   : > { %s1717_s16 = scalar_select %p29_p4, %s1489_s23, %s31_s8  }
  0x6e   : > { %p1711_p10 = por %p1864_p6, %p38_p13  ;;  %p40_p5 = por %p39_p8, %p38_p13 }
  0x6f   : > { %s254_s17 = sand.u32 1, %s1489_s23   ;;  %s1030_s14 = sshll.u32 %s1493_s24, 8 }
  0x70   : > { %s977_s19 = sshll.u32 %s254_s17, 4  ;;  %s1724_s7 = scalar_lea.hbm %s1849_s0, %s1030_s14 }
  0x71   : > { %s258_s12 = scalar_lea.vmem [#allocation2], %s977_s19  ;;  %p1728_p11 = pnand %p1197_p3, %p40_p5 }
  0x72   : > { %s265_s10 = sshll.u32 %s258_s12, 4  ;;  %s1732_s8 = scalar_lea.sflag [#allocation3], %s254_s17  ;;  %s1726_s10 = int_to_ptr.vmem [resolvable:$true] %s265_s10 }
  0x73   : > { %s1389_s13 = scalar_lea.hbm %s1724_s7, 256  ;;  %p1391_p9 = pneg %p1728_p11 }
  0x74   : > { %p1390_p7 = scmp.ne.s32.totalorder %s1724_s7, %s1389_s13  ;;  %s1394_s20 = scalar_lea.hbm %s1849_s0, 512 }
  0x75   : > { %p1395_p1 = scmp.lt.u32.totalorder %s1724_s7, %s1849_s0  ;;  %p1396_p2 = scmp.lt.u32.totalorder %s1394_s20, %s1389_s13 }
  0x76   : > { %p1392_p12 = pnand %p1391_p9, %p1390_p7  ;;  %p1398_p4 = scmp.lt.u32.totalorder %s1389_s13, %s1724_s7 }
  0x77   : > { %p1397_p13 = por %p1396_p2, %p1395_p1 }
  0x78   : > { %p1393_p0 = pneg %p1392_p12 }
  0x79   : > { %p1399_p8 = por %p1398_p4, %p1397_p13 }
  0x7b   : > { %p1400_p6 = pnand %p1399_p8, %p1393_p0 }
  0x7d   : > { %1403 = shalt.err (!%p1400_p6)
}
  0x7e   : > { %s1404_s17 = scalar_lea.vmem %s1726_s10, 256  ;;  %s1501_s19 = smov [#allocation2]  }
  0x7f   : > { %p1405_p3 = scmp.ne.s32.totalorder %s1726_s10, %s1404_s17  ;;  %s1409_s14 = sshll.u32 %s1501_s19, 4  ;;  %s1410_s14 = int_to_ptr.vmem [resolvable:$false] %s1409_s14 }
  0x80   : > { %s1411_s26 = scalar_lea.vmem %s1410_s14, 512  ;;  %p1412_p12 = scmp.lt.s32.totalorder %s1726_s10, %s1410_s14 }
  0x81   : > { %p1407_p5 = pnand %p1405_p3, %p1391_p9  ;;  %p1413_p1 = scmp.lt.s32.totalorder %s1411_s26, %s1404_s17 }
  0x83   : > { %p1408_p7 = pneg %p1407_p5  ;;  %p1414_p2 = por %p1413_p1, %p1412_p12 }
  0x85   : > { %p1415_p13 = pnand %p1414_p2, %p1408_p7 }
  0x87   : > { %1418 = shalt.err (!%p1415_p13)
}
  0x88   : > { %1188 = dma.hbm_to_vmem [thread:$0]  (!%p1728_p11), %s1724_s7, 256, %s1726_s10, %s1732_s8, %s1498_s30, %s1498_s30, %s1499_s9  }
  0x89   : > { %p1867_p9 = scmp.ne.s32.totalorder %s1861_s29, 0 }
  0x8a   : > { %s1766_s13 = sand.u32 (!%p1867_p9), 1, %s1485_s22   ;;  %p1868_p0 = scmp.ne.s32.totalorder (!%p1867_p9), %s1859_s27, 0 }
  0x8b   : > { %277 = sbr.rel (%p1867_p9) target bundleno = 1087 (0x43f), region = 44  ;;  %s981_s20 = sshll.u32 (!%p1867_p9), %s1766_s13, 4 }
  0x8c   : > { %s280_s12 = scalar_lea.sflag (!%p1867_p9), [#allocation3], %s1766_s13  ;;  %s1770_s17 = scalar_lea.vmem (!%p1867_p9), [#allocation2], %s981_s20 }
  0x92   : > { %1464 = dma.done.wait (%p1868_p0), %s280_s12, 256  }
  0x93   : > { %1466 = vsyncadd (%p1868_p0), %s280_s12, 4294967040  ;;  %p1869_p11 = scmp.eq.s32.totalorder %s1561_s25, 0 }
  0x95   : > { %1468 = dma.done.wait (%p1869_p11), [#allocation6], 2048   ;;  %p1870_p4 = pmov %p1869_p11 }
  0x97   : > { %1470 = vsyncadd (%p1870_p4), [#allocation6], 4294965248  ;;  %p1871_p8 = pmov %p1870_p4 }
  0x98   : > { %p1872_p6 = pmov %p1870_p4 }
  0x99   : > { %1472 = dma.done.wait (%p1871_p8), [#allocation9], 2048  }
  0x9a   : > { %1474 = vsyncadd (%p1872_p6), [#allocation9], 4294965248  ;;  %v1243_v0 = vld [vmem:[#allocation5] sm:$0xff]   ;;  %v1244_v1 = vld [vmem:[#allocation5 + $0x8] sm:$0xff]   ;;  %s986_s11 = sshll.u32 %s1766_s13, 5  ;;  %s1031_s20 = sshll.u32 %s1561_s25, 9 }
  0x9b   : > { %1072 = vmatprep.subr.bf16.mxu0 %v1243_v0  ;;  %v1245_v2 = vld [vmem:[#allocation5 + $0x10] sm:$0xff]   ;;  %v1246_v3 = vld [vmem:[#allocation5 + $0x18] sm:$0xff]   ;;  %v1253_v5 = vld [vmem:[#allocation7] sm:$0xff]   ;;  %s327_s14 = scalar_lea.vmem [#allocation11], %s986_s11  ;;  %s1805_s27 = scalar_lea.hbm %s1855_s6, %s1031_s20 }
  0x9c   : > { %1073 = vmatpush3.bf16.msra.mxu0 %v1243_v0  ;;  %v1251_v4 = vld [vmem:[%s1770_s17] sm:$0xff]   ;;  %v1254_v6 = vld [vmem:[#allocation7 + $0x8] sm:$0xff]   ;;  %1092 = vmatprep.subr.bf16.mxu1 %v1253_v5  ;;  %v1256_v10 = vld [vmem:[#allocation7 + $0x18] sm:$0xff]   ;;  %s859_s26 = sshll.u32 %s327_s14, 4  ;;  %s846_s25 = scalar_lea.sflag [#allocation4], %s1766_s13  ;;  %s1800_s26 = int_to_ptr.vmem [resolvable:$true] %s859_s26 }
  0x9d   : > { %1074 = vmatprep.subr.bf16.mxu0 %v1244_v1  ;;  %1088 = vmatprep.mubr.bf16.mxu0 %v1251_v4  ;;  %v1247_v7 = vld [vmem:[#allocation5 + $0x20] sm:$0xff]   ;;  %v1255_v8 = vld [vmem:[#allocation7 + $0x10] sm:$0xff]   ;;  %v1248_v9 = vld [vmem:[#allocation5 + $0x28] sm:$0xff]   ;;  %s1419_s29 = scalar_lea.vmem %s1800_s26, 512  ;;  %s1502_s30 = smov [#allocation11]  }
  0x9e   : > { %1093 = vmatpush3.bf16.msra.mxu1 %v1253_v5  ;;  %v1249_v11 = vld [vmem:[#allocation5 + $0x30] sm:$0xff]   ;;  %v1257_v12 = vld [vmem:[#allocation7 + $0x20] sm:$0xff]   ;;  %v1250_v13 = vld [vmem:[#allocation5 + $0x38] sm:$0xff]   ;;  %p1420_p3 = scmp.ne.s32.totalorder %s1800_s26, %s1419_s29  ;;  %s1423_s9 = sshll.u32 %s1502_s30, 4  ;;  %s1424_s9 = int_to_ptr.vmem [resolvable:$false] %s1423_s9 }
  0x9f   : > { %1094 = vmatprep.subr.bf16.mxu1 %v1254_v6  ;;  %v1258_v14 = vld [vmem:[#allocation7 + $0x28] sm:$0xff]   ;;  %v1259_v16 = vld [vmem:[#allocation7 + $0x30] sm:$0xff]   ;;  %v1260_v17 = vld [vmem:[#allocation7 + $0x38] sm:$0xff]   ;;  %s1425_s7 = scalar_lea.vmem %s1424_s9, 1024  ;;  %p1426_p12 = scmp.lt.s32.totalorder %s1800_s26, %s1424_s9 }
  0xa0   : > { %1075 = vmatpush3.bf16.msra.mxu0 %v1244_v1  ;;  %v1252_v15 = vld [vmem:[%s1770_s17 + $0x8] sm:$0xff]   ;;  %v1261_v18 = vld [vmem:[#allocation8] sm:$0xff]   ;;  %v1263_v20 = vld [vmem:[#allocation8 + $0x10] sm:$0xff]   ;;  %p1421_p5 = pnand %p1420_p3, %p1711_p10  ;;  %p1427_p1 = scmp.lt.s32.totalorder %s1425_s7, %s1419_s29 }
  0xa1   : > { %1076 = vmatprep.subr.bf16.mxu0 %v1245_v2  ;;  %v1262_v19 = vld [vmem:[#allocation8 + $0x8] sm:$0xff]   ;;  %v1264_v21 = vld [vmem:[#allocation8 + $0x18] sm:$0xff]   ;;  %v1265_v22 = vld [vmem:[#allocation8 + $0x20] sm:$0xff]  }
  0xa2   : > { %1095 = vmatpush3.bf16.msra.mxu1 %v1254_v6  ;;  %v987_v24 = vld [vmem:[%s1854_s5] ss:$0 sm:$0xff]  ;;  %v1266_v34 = vld [vmem:[#allocation8 + $0x28] sm:$0xff]   ;;  %v1267_v35 = vld [vmem:[#allocation8 + $0x30] sm:$0xff]   ;;  %p1422_p7 = pneg %p1421_p5  ;;  %p1428_p2 = por %p1427_p1, %p1426_p12 }
  0xa3   : > { %1096 = vmatprep.subr.bf16.mxu1 %v1255_v8  ;;  %v1268_v36 = vld [vmem:[#allocation8 + $0x38] sm:$0xff]   ;;  %v1269_v37 = vld [vmem:[#allocation10] sm:$0xff]   ;;  %v1270_v38 = vld [vmem:[#allocation10 + $0x8] sm:$0xff]  }
  0xa4   : > { %1077 = vmatpush3.bf16.msra.mxu0 %v1245_v2  ;;  %v1271_v39 = vld [vmem:[#allocation10 + $0x10] sm:$0xff]   ;;  %v1272_v40 = vld [vmem:[#allocation10 + $0x18] sm:$0xff]   ;;  %v1273_v41 = vld [vmem:[#allocation10 + $0x20] sm:$0xff]   ;;  %p1429_p13 = pnand %p1428_p2, %p1422_p7 }
  0xa5   : > { %1078 = vmatprep.subr.bf16.mxu0 %v1246_v3  ;;  %v998_v42 = vld [vmem:[%s1854_s5 + $0x1] ss:$0 sm:$0xff]  ;;  %v1274_v61 = vld [vmem:[#allocation10 + $0x28] sm:$0xff]   ;;  %v1275_v62 = vld [vmem:[#allocation10 + $0x30] sm:$0xff]  }
  0xa6   : > { %1097 = vmatpush3.bf16.msra.mxu1 %v1255_v8  ;;  %v1276_v63 = vld [vmem:[#allocation10 + $0x38] sm:$0xff]   ;;  %v1007_v0 = vld [vmem:[%s1854_s5 + $0x2] ss:$0 sm:$0xff] }
  0xa7   : > { %1098 = vmatprep.subr.bf16.mxu1 %v1256_v10 }
  0xa8   : > { %1079 = vmatpush3.bf16.msra.mxu0 %v1246_v3 }
  0xa9   : > { %1080 = vmatprep.subr.bf16.mxu0 %v1247_v7 }
  0xaa   : > { %1099 = vmatpush3.bf16.msra.mxu1 %v1256_v10 }
  0xab   : > { %1100 = vmatprep.subr.bf16.mxu1 %v1257_v12 }
  0xac   : > { %1081 = vmatpush3.bf16.msra.mxu0 %v1247_v7 }
  0xad   : > { %1082 = vmatprep.subr.bf16.mxu0 %v1248_v9 }
  0xae   : > { %1101 = vmatpush3.bf16.msra.mxu1 %v1257_v12 }
  0xaf   : > { %1102 = vmatprep.subr.bf16.mxu1 %v1258_v14 }
  0xb0   : > { %1083 = vmatpush3.bf16.msra.mxu0 %v1248_v9 }
  0xb1   : > { %1084 = vmatprep.subr.bf16.mxu0 %v1249_v11 }
  0xb2   : > { %1103 = vmatpush3.bf16.msra.mxu1 %v1258_v14 }
  0xb3   : > { %1104 = vmatprep.subr.bf16.mxu1 %v1259_v16 }
  0xb4   : > { %1085 = vmatpush3.bf16.msra.mxu0 %v1249_v11 }
  0xb5   : > { %1086 = vmatprep.subr.bf16.mxu0 %v1250_v13 }
  0xb6   : > { %1105 = vmatpush3.bf16.msra.mxu1 %v1259_v16 }
  0xb7   : > { %1106 = vmatprep.subr.bf16.mxu1 %v1260_v17 }
  0xb8   : > { %1087 = vmatpush3.bf16.msra.mxu0 %v1250_v13 }
  0xb9   : > { %1112 = vmatprep.subr.bf16.mxu0 %v1261_v18 }
  0xba   : > { %1107 = vmatpush3.bf16.msra.mxu1 %v1260_v17 }
  0xbb   : > { %1089 = vmatmul.mubr.bf16.vlgmr.msra.gmra.mrb[0].mxu0 %v1252_v15  ;;  %1132 = vmatprep.subr.bf16.mxu1 %v1269_v37 }
  0xbc   : > { %1113 = vmatpush3.bf16.msra.mxu0 %v1261_v18 }
  0xbd   : > { %1114 = vmatprep.subr.bf16.mxu0 %v1262_v19 }
  0xc0   : > { %1115 = vmatpush3.bf16.msra.mxu0 %v1262_v19  ;;  %v1016_v19 = vld [vmem:[%s1854_s5 + $0x3] ss:$0 sm:$0xff] }
  0xc1   : > { %1116 = vmatprep.subr.bf16.mxu0 %v1263_v20 }
  0xc4   : > { %1117 = vmatpush3.bf16.msra.mxu0 %v1263_v20 }
  0xc5   : > { %1118 = vmatprep.subr.bf16.mxu0 %v1264_v21 }
  0xc8   : > { %1119 = vmatpush3.bf16.msra.mxu0 %v1264_v21 }
  0xc9   : > { %1120 = vmatprep.subr.bf16.mxu0 %v1265_v22 }
  0xcc   : > { %1121 = vmatpush3.bf16.msra.mxu0 %v1265_v22 }
  0xcd   : > { %1122 = vmatprep.subr.bf16.mxu0 %v1266_v34 }
  0xd0   : > { %1123 = vmatpush3.bf16.msra.mxu0 %v1266_v34 }
  0xd1   : > { %1124 = vmatprep.subr.bf16.mxu0 %v1267_v35 }
  0xd4   : > { %1125 = vmatpush3.bf16.msra.mxu0 %v1267_v35 }
  0xd5   : > { %1126 = vmatprep.subr.bf16.mxu0 %v1268_v36 }
  0xd8   : > { %1127 = vmatpush3.bf16.msra.mxu0 %v1268_v36 }
 0x18e   : > { %v1090_v23 = vpop.f32.mrb[0].mxu0 }
 0x18f   : > { %v450_v25 = vpop.f32.mrb[1].mxu0  ;;  %v459_v31 = vadd.f32 %v1090_v23, %v987_v24 }
 0x190   : > { %v1091_v26 = vpop.f32.mrb[2].mxu0  ;;  %v451_v29 = vadd.f32 %v987_v24, %v450_v25 }
 0x191   : > { %v462_v27 = vadd.f32 %v1091_v26, %v987_v24  ;;  %v453_v28 = vpop.f32.mrb[3].mxu0 }
 0x192   : > { %v454_v30 = vadd.f32 %v987_v24, %v453_v28 }
 0x193   : > { %v466_v33 = vpack.c.bf16 %v462_v27, %v459_v31 }
 0x194   : > { %v465_v32 = vpack.c.bf16 %v454_v30, %v451_v29 }
 0x196   : > { %1108 = vmatprep.mubr.bf16.mxu1 %v465_v32 }
 0x197   : > { %1109 = vmatmul.mubr.bf16.vlgmr.msra.gmra.mrb[0].mxu1 %v466_v33 }
 0x198   : > { %1133 = vmatpush3.bf16.msra.mxu1 %v1269_v37 }
 0x199   : > { %1134 = vmatprep.subr.bf16.mxu1 %v1270_v38 }
 0x19c   : > { %1135 = vmatpush3.bf16.msra.mxu1 %v1270_v38 }
 0x19d   : > { %1136 = vmatprep.subr.bf16.mxu1 %v1271_v39 }
 0x1a0   : > { %1137 = vmatpush3.bf16.msra.mxu1 %v1271_v39 }
 0x1a1   : > { %1138 = vmatprep.subr.bf16.mxu1 %v1272_v40 }
 0x1a4   : > { %1139 = vmatpush3.bf16.msra.mxu1 %v1272_v40 }
 0x1a5   : > { %1140 = vmatprep.subr.bf16.mxu1 %v1273_v41 }
 0x1a8   : > { %1141 = vmatpush3.bf16.msra.mxu1 %v1273_v41 }
 0x1a9   : > { %1142 = vmatprep.subr.bf16.mxu1 %v1274_v61 }
 0x1ac   : > { %1143 = vmatpush3.bf16.msra.mxu1 %v1274_v61 }
 0x1ad   : > { %1144 = vmatprep.subr.bf16.mxu1 %v1275_v62 }
 0x1b0   : > { %1145 = vmatpush3.bf16.msra.mxu1 %v1275_v62 }
 0x1b1   : > { %1146 = vmatprep.subr.bf16.mxu1 %v1276_v63 }
 0x1b4   : > { %1147 = vmatpush3.bf16.msra.mxu1 %v1276_v63 }
 0x26a   : > { %v1110_v43 = vpop.f32.mrb[0].mxu1 }
 0x26b   : > { %v579_v44 = vadd.f32 %v1110_v43, %v998_v42  ;;  %v570_v45 = vpop.f32.mrb[1].mxu1 }
 0x26c   : > { %v571_v46 = vadd.f32 %v998_v42, %v570_v45  ;;  %v1111_v47 = vpop.f32.mrb[2].mxu1 }
 0x26d   : > { %v582_v48 = vadd.f32 %v1111_v47, %v998_v42  ;;  %v573_v49 = vpop.f32.mrb[3].mxu1  ;;  %v587_v52 = vmax.f32 %v579_v44, 0.0 }
 0x26e   : > { %v585_v50 = vmax.f32 %v571_v46, 0.0  ;;  %v574_v51 = vadd.f32 %v998_v42, %v573_v49 }
 0x26f   : > { %v588_v53 = vmax.f32 %v582_v48, 0.0  ;;  %v591_v58 = vadd.f32 %v587_v52, %v459_v31 }
 0x270   : > { %v586_v54 = vmax.f32 %v574_v51, 0.0  ;;  %v589_v56 = vadd.f32 %v585_v50, %v451_v29 }
 0x271   : > { %v592_v55 = vadd.f32 %v588_v53, %v462_v27 }
 0x272   : > { %v590_v57 = vadd.f32 %v586_v54, %v454_v30 }
 0x273   : > { %v594_v60 = vpack.c.bf16 %v592_v55, %v591_v58 }
 0x274   : > { %v593_v59 = vpack.c.bf16 %v590_v57, %v589_v56 }
 0x276   : > { %1128 = vmatprep.mubr.bf16.mxu0 %v593_v59 }
 0x277   : > { %1129 = vmatmul.mubr.bf16.vlgmr.msra.gmra.mrb[4].mxu0 %v594_v60 }
 0x34a   : > { %v1130_v1 = vpop.f32.mrb[4].mxu0 }
 0x34b   : > { %v707_v2 = vadd.f32 %v1130_v1, %v1007_v0  ;;  %v698_v3 = vpop.f32.mrb[5].mxu0 }
 0x34c   : > { %v699_v4 = vadd.f32 %v1007_v0, %v698_v3  ;;  %v1131_v5 = vpop.f32.mrb[6].mxu0 }
 0x34d   : > { %v715_v6 = vmax.f32 %v707_v2, 0.0  ;;  %v710_v7 = vadd.f32 %v1131_v5, %v1007_v0  ;;  %v701_v8 = vpop.f32.mrb[7].mxu0 }
 0x34e   : > { %v713_v9 = vmax.f32 %v699_v4, 0.0  ;;  %v702_v10 = vadd.f32 %v1007_v0, %v701_v8 }
 0x34f   : > { %v716_v11 = vmax.f32 %v710_v7, 0.0  ;;  %v719_v13 = vadd.f32 %v715_v6, %v591_v58 }
 0x350   : > { %v714_v12 = vmax.f32 %v702_v10, 0.0  ;;  %v717_v15 = vadd.f32 %v713_v9, %v589_v56 }
 0x351   : > { %v720_v14 = vadd.f32 %v716_v11, %v592_v55 }
 0x352   : > { %v718_v16 = vadd.f32 %v714_v12, %v590_v57 }
 0x353   : > { %v722_v17 = vpack.c.bf16 %v720_v14, %v719_v13 }
 0x354   : > { %v721_v18 = vpack.c.bf16 %v718_v16, %v717_v15 }
 0x356   : > { %1148 = vmatprep.mubr.bf16.mxu1 %v721_v18 }
 0x357   : > { %1149 = vmatmul.mubr.bf16.vlgmr.msra.gmra.mrb[4].mxu1 %v722_v17 }
 0x42a   : > { %v1150_v20 = vpop.f32.mrb[4].mxu1 }
 0x42b   : > { %v835_v21 = vadd.f32 %v1150_v20, %v1016_v19  ;;  %v826_v22 = vpop.f32.mrb[5].mxu1 }
 0x42c   : > { %v827_v23 = vadd.f32 %v1016_v19, %v826_v22  ;;  %v1151_v24 = vpop.f32.mrb[6].mxu1 }
 0x42d   : > { %843 = vst [vmem:[%s327_s14 + $0x10] sm:$0xff] %v835_v21  ;;  %v838_v25 = vadd.f32 %v1151_v24, %v1016_v19  ;;  %v829_v26 = vpop.f32.mrb[7].mxu1 }
 0x42e   : > { %841 = vst [vmem:[%s327_s14] sm:$0xff] %v827_v23  ;;  %v830_v27 = vadd.f32 %v1016_v19, %v829_v26 }
 0x42f   : > { %844 = vst [vmem:[%s327_s14 + $0x18] sm:$0xff] %v838_v25 }
 0x430   : > { %842 = vst [vmem:[%s327_s14 + $0x8] sm:$0xff] %v830_v27 }
 0x431   : > { %1432 = shalt.err (!%p1429_p13)
}
 0x432   : > { %s1433_s10 = scalar_lea.hbm %s1805_s27, 512  ;;  %s1437_s19 = scalar_lea.hbm %s1855_s6, 1024 }
 0x433   : > { %p1434_p9 = scmp.ne.s32.totalorder %s1805_s27, %s1433_s10  ;;  %p1438_p4 = scmp.lt.u32.totalorder %s1805_s27, %s1855_s6 }
 0x434   : > { %p1439_p8 = scmp.lt.u32.totalorder %s1437_s19, %s1433_s10  ;;  %p1441_p3 = scmp.lt.u32.totalorder %s1433_s10, %s1805_s27 }
 0x435   : > { %p1435_p0 = pnand %p1434_p9, %p1711_p10 }
 0x436   : > { %p1440_p6 = por %p1439_p8, %p1438_p4 }
 0x437   : > { %p1436_p11 = pneg %p1435_p0 }
 0x438   : > { %p1442_p5 = por %p1441_p3, %p1440_p6 }
 0x43a   : > { %p1443_p7 = pnand %p1442_p5, %p1436_p11 }
 0x43c   : > { %1446 = shalt.err (!%p1443_p7)
}
 0x43d   : > { %s1503_s12 = smov 128   ;;  %s1504_s17 = smov 8  }
 0x43e   : > { %1170 = dma.vmem_to_hbm [thread:$0]  (%p1711_p10), %s1800_s26, 512, %s1805_s27, %s846_s25, %s1503_s12, %s1503_s12, %s1504_s17  }
 0x43f PF: > { %s874_s29 = sand.u32 1, %s1481_s21   ;;  %p1873_p12 = scmp.ne.s32.totalorder %s1860_s28, 0 }
 0x440   : > { %p1874_p1 = scmp.ge.s32.totalorder %s1493_s24, 2  ;;  %s875_s30 = scalar_lea.sflag [#allocation4], %s874_s29 }
 0x442   : > { %p1190_p2 = pnand %p1874_p1, %p1873_p12 }
 0x444   : > { %1476 = dma.done.wait (!%p1190_p2), %s875_s30, 512  }
 0x445   : > { %1478 = vsyncadd (!%p1190_p2), %s875_s30, 4294966784  ;;  %p21_p13 = scmp.ge.s32.totalorder %s1701_s18, 4   ;;  %s1875_s21 = smov %s1485_s22 }
 0x446   : > { %s1876_s22 = smov %s1489_s23  ;;  %s1877_s23 = smov %s1717_s16 }
 0x447   : > { %s1878_s24 = smov %s1701_s18  ;;  %23 = sbr.rel (!%p21_p13) target bundleno = 7 (0x7), region = 105 }
 0x44e   :  { %880 = vsyncpa [#allocation3], 1 }
 0x44f   :  { %882 = vsyncpa [#allocation3 + $0x1], 1 }
 0x450   :  { %883 = vsyncpa [#allocation6], 1 }
 0x451   :  { %884 = vsyncpa [#allocation9], 1 }
 0x452   :  { %885 = vsyncpa [#allocation4], 1 }
 0x453   :  { %887 = vsyncpa [#allocation4 + $0x1], 1 }

</bundles_post_ra>
